<compile_context>
chip_gen: v5e
topology: v5e:2x2
jax: 0.10.0
libtpu: 0.0.40
codegen_flags: <defaults>
</compile_context>

<pallas_src>
import functools

import jax
import jax.numpy as jnp
import numpy as np
from jax.experimental import pallas as pl
from jax.experimental.pallas import tpu as pltpu

REPLICATE = 50  # matches CLIPEnergy.self.replicate

# CLIP preprocess Normalize constants (clip_preprocess.transforms[4:])
_CLIP_MEAN = np.array([0.48145466, 0.4578275, 0.40821073], dtype=np.float32)
_CLIP_STD = np.array([0.26862954, 0.26130258, 0.27577711], dtype=np.float32)


def _clip_energy_kernel(R, R_pad, G, E, M, T,
                        mw_ref, img_ref, w_ref, txt_ref, bias_ref,
                        out_ref, feat_acc, x_buf):
    """Grid = (image-group g, D-chunk k).

      aug    = clip(scale[r]*img + shift[r], 0, 1)        (fused replicate+jitter)
      feat   = aug @ W' - bias      (all models at once; accumulated over k, f32)
      sim_m  = (feat_m @ text_m^T) / ||feat_m||            (text pre-normalized)
      loss   = sum_m w_m * mean_t(1 - sim_m); per-image = mean over R replicates
    """
    k = pl.program_id(1)
    n_k = pl.num_programs(1)
    GR = G * R_pad

    @pl.when(k == 0)
    def _():
        feat_acc[...] = jnp.zeros_like(feat_acc)

    # ---- fused replicate + deterministic color jitter (VPU) -----------------
    img_rows = img_ref[:, 0, :]                                   # (G, tk) f32
    r = jax.lax.broadcasted_iota(jnp.int32, (R_pad, 1), 0).astype(jnp.float32)
    rj = r * (1.0 / R) - 0.5
    scale = 1.0 + 0.2 * rj                                        # (R_pad, 1)
    shift = 0.1 * rj                                              # (R_pad, 1)
    aug = jnp.clip(img_rows[:, None, :] * scale + shift, 0.0, 1.0)  # (G,R_pad,tk)
    x_buf[...] = aug.reshape(GR, -1).astype(jnp.bfloat16)

    # ---- all synthetic image encoders at once: bf16 MXU, f32 accumulation ---
    feat_acc[...] += jnp.dot(x_buf[...], w_ref[...],
                             preferred_element_type=jnp.float32)   # (GR, M*E)

    @pl.when(k == n_k - 1)
    def _():
        feat = feat_acc[...] - bias_ref[...]            # Normalize fold: -mos@W
        total = jnp.zeros((GR, 1), jnp.float32)
        for m in range(M):                              # static, tiny ensemble
            f = feat[:, m * E:(m + 1) * E]                               # (GR,E)
            inv_norm = jax.lax.rsqrt(
                jnp.sum(f * f, axis=-1, keepdims=True) + 1e-12)          # (GR,1)
            tm = txt_ref[m]                                              # (T, E)
            if T == 1:
                # single text prompt: VPU multiply + lane reduce
                s = jnp.sum(f * tm, axis=-1, keepdims=True)              # (GR,1)
            else:
                s = jax.lax.dot_general(
                    f, tm, dimension_numbers=(((1,), (1,)), ((), ())),
                    preferred_element_type=jnp.float32)                  # (GR,T)
            loss_rows = jnp.mean(1.0 - s * inv_norm, axis=-1, keepdims=True)
            total = total + mw_ref[m] * loss_rows
        # mask padded replicate rows, then mean over the R real replicates
        total3 = total.reshape(G, R_pad, 1)
        rep_ids = jax.lax.broadcasted_iota(jnp.int32, (R_pad, 1), 0)
        total3 = jnp.where(rep_ids < R, total3, 0.0)
        per_img = jnp.sum(total3, axis=1) * (1.0 / R)                    # (G, 1)
        if G < 8:
            per_img = jnp.concatenate(
                [per_img, jnp.zeros((8 - G, 1), jnp.float32)], axis=0)
        out_ref[0] = jnp.broadcast_to(per_img, (8, 128))


def clip_energy_forward(img, w_stack, text_feats, model_weights,
                        replicate=REPLICATE, tk=2048, group=4):
    """img: [B, C, H, W] float32 in [0, 1]. Returns clip_loss of shape [B]."""
    B, C, H, W = img.shape
    R = replicate
    M, D, E = w_stack.shape
    T = text_feats.shape[1]
    assert D == C * H * W
    assert E % 128 == 0

    R_pad = -(-R // 8) * 8

    # --- image grouping: reuse each weight chunk across G images; keep >= 2
    #     groups when possible so both v7x TensorCores get work.
    G = max(1, min(group, 8, B))
    while G > 1 and -(-B // G) < 2:
        G //= 2
    n_groups = -(-B // G)
    B_pad = n_groups * G

    # --- K tiling along D (large chunks so per-step work >> pipeline overhead)
    d128 = -(-D // 128) * 128
    tk = min(max(128, (tk // 128) * 128), d128)
    D_pad = -(-D // tk) * tk
    n_k = D_pad // tk
    pad_d = D_pad - D

    # --- DiffAugment('color,translation,resize,cutout') stand-in -------------
    # TODO(synk): translation/resize/cutout are stochastic spatial augmentations
    # with no clean deterministic Pallas equivalent; only a deterministic
    # per-replicate color jitter (scale + brightness) is applied, inside the kernel.
    # TODO(synk): Resize(224)/CenterCrop (clip_preprocess.transforms[:2]) omitted;
    # the synthetic encoder consumes the raw HxW resolution directly.

    # flattened NCHW images, one row per image (replicates generated in-kernel)
    img_flat = jnp.pad(img.reshape(B, 1, D).astype(jnp.float32),
                       ((0, B_pad - B), (0, 0), (0, pad_d)))

    # CLIP Normalize folded into the projection weights (f32, before bf16 cast):
    #   ((aug - mean)/std) @ W  ==  aug @ (W/std[:,None])  -  (mean/std) @ W
    mean_flat = jnp.asarray(np.repeat(_CLIP_MEAN[:C], H * W).astype(np.float32))
    std_flat = jnp.asarray(np.repeat(_CLIP_STD[:C], H * W).astype(np.float32))
    w_folded = w_stack.astype(jnp.float32) * (1.0 / std_flat)[None, :, None]
    bias = jnp.einsum('d,mde->me', mean_flat / std_flat,
                      w_stack.astype(jnp.float32))                    # (M, E)
    # concat all models along E (lane-dense, >=256-wide MXU RHS), pad D, cast bf16
    w_all = jnp.transpose(w_folded, (1, 0, 2)).reshape(D, M * E)
    w_all = jnp.pad(w_all, ((0, pad_d), (0, 0))).astype(jnp.bfloat16)
    bias_flat = bias.reshape(1, M * E)

    txt = text_feats.astype(jnp.float32)            # [M, T, E], pre-normalized
    mw = model_weights.astype(jnp.float32)

    GR = G * R_pad
    ME = M * E

    # VMEM budget (double-buffered W/img streams + accumulators + headroom);
    # capped at 48 MiB so the same config is safe on v7x's 64 MiB physical VMEM.
    # (On v5e, a third W buffer via pipeline_mode=pl.Buffered(3) could be added.)
    vmem_need = (2 * tk * ME * 2 + 2 * G * tk * 4 + GR * ME * 4
                 + GR * tk * 2 + GR * tk * 4
                 + M * T * E * 4 + ME * 4 + 2 * 8 * 128 * 4)
    vmem_limit = int(min(max(int(vmem_need * 1.3) + (2 << 20), 16 << 20), 48 << 20))

    kernel = functools.partial(_clip_energy_kernel, R, R_pad, G, E, M, T)

    out = pl.pallas_call(
        kernel,
        out_shape=jax.ShapeDtypeStruct((n_groups, 8, 128), jnp.float32),
        grid_spec=pltpu.PrefetchScalarGridSpec(
            num_scalar_prefetch=0,
            grid=(n_groups, n_k),
            in_specs=[
                # clip_model_weights, resident in SMEM
                pl.BlockSpec(memory_space=pltpu.MemorySpace.SMEM),
                # G images, one D-chunk per step (replicates generated in-kernel)
                pl.BlockSpec((G, 1, tk), lambda g, k: (g, 0, k)),
                # folded+concatenated projection weights, one D-chunk per step
                pl.BlockSpec((tk, ME), lambda g, k: (k, 0)),
                # per-model normalized text features (resident)
                pl.BlockSpec((M, T, E), lambda g, k: (0, 0, 0)),
                # Normalize-fold bias (mean/std)@W per model (resident)
                pl.BlockSpec((1, ME), lambda g, k: (0, 0)),
            ],
            # lane-dense (8,128) output block per group, written once at k==last
            out_specs=pl.BlockSpec((1, 8, 128), lambda g, k: (g, 0, 0)),
            scratch_shapes=[pltpu.VMEM((GR, ME), jnp.float32),    # feat accum
                            pltpu.VMEM((GR, tk), jnp.bfloat16)],  # bf16 LHS stage
        ),
        compiler_params=pltpu.CompilerParams(
            dimension_semantics=("parallel", "arbitrary"),
            vmem_limit_bytes=vmem_limit),
        cost_estimate=pl.CostEstimate(
            flops=2 * B_pad * R_pad * D_pad * ME + 6 * B_pad * R_pad * ME,
            transcendentals=B_pad * R_pad * M,
            bytes_accessed=(img_flat.size * 4 + n_groups * w_all.size * 2
                            + txt.size * 4 + bias_flat.size * 4
                            + n_groups * 8 * 128 * 4)),
    )(mw, img_flat, w_all, txt, bias_flat)

    # loss.view(B, R).mean(1) and the weighted ensemble sum are done in-kernel.
    return out[:, :G, 0].reshape(-1)[:B]


def _reference(img, w_stack, text_feats, model_weights, replicate=REPLICATE):
    """Pure-JAX f32 reference with identical semantics (for validation)."""
    B, C, H, W = img.shape
    R = replicate
    r = jnp.arange(R, dtype=jnp.float32)
    scale = 1.0 + 0.2 * (r / R - 0.5)
    shift = 0.1 * (r / R - 0.5)
    aug = jnp.clip(img[:, None] * scale[None, :, None, None, None]
                   + shift[None, :, None, None, None], 0.0, 1.0)
    mean = jnp.asarray(_CLIP_MEAN[:C]).reshape(1, 1, C, 1, 1)
    std = jnp.asarray(_CLIP_STD[:C]).reshape(1, 1, C, 1, 1)
    x = ((aug - mean) / std).reshape(B * R, C * H * W)
    total = jnp.zeros((B,), jnp.float32)
    for m in range(w_stack.shape[0]):
        feat = x @ w_stack[m]
        feat = feat / jnp.linalg.norm(feat, axis=-1, keepdims=True)
        sim = feat @ text_feats[m].T
        loss = (1.0 - sim).mean(-1).reshape(B, R).mean(-1)
        total = total + model_weights[m] * loss
    return total


if __name__ == "__main__":
    key = jax.random.PRNGKey(0)
    B, C, H, W = 2, 3, 16, 16   # small image batch (NCHW)
    E = 128                     # synthetic CLIP embedding dim (lane-aligned)
    T = 1                       # single text prompt ("target_class")
    M = 2                       # ensemble of 2 CLIP models
    D = C * H * W

    k_img, k_w, k_t = jax.random.split(key, 3)
    img = jax.random.uniform(k_img, (B, C, H, W), dtype=jnp.float32)

    # deterministic synthetic "CLIP image encoder" projection per model
    w_stack = 0.02 * jax.random.normal(k_w, (M, D, E), dtype=jnp.float32)
    # deterministic synthetic encode_text output, L2-normalized (get_text_features)
    text_raw = jax.random.normal(k_t, (M, T, E), dtype=jnp.float32)
    text_feats = text_raw / jnp.linalg.norm(text_raw, axis=-1, keepdims=True)
    model_weights = jnp.array([0.6, 0.4], dtype=jnp.float32)

    out = clip_energy_forward(img, w_stack, text_feats, model_weights)
    out = jax.block_until_ready(out)
    assert out.shape == (B,)

    ref = jax.block_until_ready(
        _reference(img, w_stack, text_feats, model_weights))
    np.testing.assert_allclose(np.asarray(out), np.asarray(ref),
                               rtol=3e-2, atol=3e-2)
    print("KERNEL_OK")
</pallas_src>

<mosaic_0001>
module attributes {stable_mosaic.version = 11 : i64} {
  func.func @_clip_energy_kernel(%arg0: i32, %arg1: i32, %arg2: memref<2xf32, #tpu.memory_space<smem>>, %arg3: memref<1x1x768xf32, #tpu.memory_space<vmem>>, %arg4: memref<768x256xbf16, #tpu.memory_space<vmem>>, %arg5: memref<2x1x128xf32, #tpu.memory_space<vmem>>, %arg6: memref<1x256xf32, #tpu.memory_space<vmem>>, %arg7: memref<1x8x128xf32, #tpu.memory_space<vmem>>, %arg8: memref<56x256xf32, #tpu.memory_space<vmem>>, %arg9: memref<56x768xbf16, #tpu.memory_space<vmem>>) attributes {dimension_semantics = [#tpu.dimension_semantics<parallel>, #tpu.dimension_semantics<arbitrary>], iteration_bounds = array<i64: 2, 1>, scalar_prefetch = 0 : i64, scratch_operands = 2 : i64, tpu.core_type = #tpu.core_type<tc>, window_params = [{transform_indices = @transform_0, window_bounds = array<i64: 2>}, {transform_indices = @transform_1, window_bounds = array<i64: 1, 1, 768>}, {transform_indices = @transform_2, window_bounds = array<i64: 768, 256>}, {pipeline_mode = #tpu.pipeline_mode<synchronous>, transform_indices = @transform_3, window_bounds = array<i64: 2, 1, 128>}, {pipeline_mode = #tpu.pipeline_mode<synchronous>, transform_indices = @transform_4, window_bounds = array<i64: 1, 256>}, {transform_indices = @transform_5, window_bounds = array<i64: 1, 8, 128>}]} {
    %c0_i32 = arith.constant 0 : i32
    %0 = arith.cmpi eq, %arg1, %c0_i32 : i32
    %1 = arith.extui %0 : i1 to i32
    %c0_i32_0 = arith.constant 0 : i32
    %2 = arith.cmpi ne, %1, %c0_i32_0 : i32
    scf.if %2 {
      %cst_22 = arith.constant 0.000000e+00 : f32
      %41 = vector.broadcast %cst_22 : f32 to vector<56x256xf32>
      %c0_23 = arith.constant 0 : index
      %c0_24 = arith.constant 0 : index
      %42 = vector.load %arg8[%c0_23, %c0_24] : memref<56x256xf32, #tpu.memory_space<vmem>>, vector<56x256xf32>
      tpu.vector_store %arg8[%c0_23, %c0_24], %41 {strides = array<i32>} : memref<56x256xf32, #tpu.memory_space<vmem>>, vector<56x256xf32>,
    } else {
    }
    %c0 = arith.constant 0 : index
    %c0_1 = arith.constant 0 : index
    %c0_2 = arith.constant 0 : index
    %3 = vector.load %arg3[%c0, %c0_1, %c0_2] : memref<1x1x768xf32, #tpu.memory_space<vmem>>, vector<1x1x768xf32>
    %4 = vector.shape_cast %3 : vector<1x1x768xf32> to vector<1x768xf32>
    %5 = tpu.iota {dimensions = array<i32: 0>} : vector<56x1xi32>
    %6 = arith.sitofp %5 : vector<56x1xi32> to vector<56x1xf32>
    %cst = arith.constant 2.000000e-02 : f32
    %7 = vector.broadcast %cst : f32 to vector<56x1xf32>
    %8 = arith.mulf %6, %7 : vector<56x1xf32>
    %cst_3 = arith.constant 5.000000e-01 : f32
    %9 = vector.broadcast %cst_3 : f32 to vector<56x1xf32>
    %10 = arith.subf %8, %9 : vector<56x1xf32>
    %cst_4 = arith.constant 2.000000e-01 : f32
    %11 = vector.broadcast %cst_4 : f32 to vector<56x1xf32>
    %12 = arith.mulf %11, %10 : vector<56x1xf32>
    %cst_5 = arith.constant 1.000000e+00 : f32
    %13 = vector.broadcast %cst_5 : f32 to vector<56x1xf32>
    %14 = arith.addf %13, %12 : vector<56x1xf32>
    %cst_6 = arith.constant 1.000000e-01 : f32
    %15 = vector.broadcast %cst_6 : f32 to vector<56x1xf32>
    %16 = arith.mulf %15, %10 : vector<56x1xf32>
    %17 = vector.shape_cast %4 : vector<1x768xf32> to vector<1x1x768xf32>
    %18 = vector.shape_cast %14 : vector<56x1xf32> to vector<1x56x1xf32>
    %19 = vector.broadcast %17 : vector<1x1x768xf32> to vector<1x56x768xf32>
    %20 = vector.broadcast %18 : vector<1x56x1xf32> to vector<1x56x768xf32>
    %21 = arith.mulf %19, %20 : vector<1x56x768xf32>
    %22 = vector.shape_cast %16 : vector<56x1xf32> to vector<1x56x1xf32>
    %23 = vector.broadcast %22 : vector<1x56x1xf32> to vector<1x56x768xf32>
    %24 = arith.addf %21, %23 : vector<1x56x768xf32>
    %cst_7 = arith.constant 0.000000e+00 : f32
    %cst_8 = arith.constant 1.000000e+00 : f32
    %25 = vector.broadcast %cst_7 : f32 to vector<1x56x768xf32>
    %26 = arith.maximumf %25, %24 : vector<1x56x768xf32>
    %27 = vector.broadcast %cst_8 : f32 to vector<1x56x768xf32>
    %28 = arith.minimumf %27, %26 : vector<1x56x768xf32>
    %29 = vector.shape_cast %28 : vector<1x56x768xf32> to vector<56x768xf32>
    %30 = arith.truncf %29 : vector<56x768xf32> to vector<56x768xbf16>
    %c0_9 = arith.constant 0 : index
    %c0_10 = arith.constant 0 : index
    %31 = vector.load %arg9[%c0_9, %c0_10] : memref<56x768xbf16, #tpu.memory_space<vmem>>, vector<56x768xbf16>
    tpu.vector_store %arg9[%c0_9, %c0_10], %30 {strides = array<i32>} : memref<56x768xbf16, #tpu.memory_space<vmem>>, vector<56x768xbf16>,
    %c0_11 = arith.constant 0 : index
    %c0_12 = arith.constant 0 : index
    %32 = vector.load %arg8[%c0_11, %c0_12] : memref<56x256xf32, #tpu.memory_space<vmem>>, vector<56x256xf32>
    %c0_13 = arith.constant 0 : index
    %c0_14 = arith.constant 0 : index
    %33 = vector.load %arg9[%c0_13, %c0_14] : memref<56x768xbf16, #tpu.memory_space<vmem>>, vector<56x768xbf16>
    %c0_15 = arith.constant 0 : index
    %c0_16 = arith.constant 0 : index
    %34 = vector.load %arg4[%c0_15, %c0_16] : memref<768x256xbf16, #tpu.memory_space<vmem>>, vector<768x256xbf16>
    %cst_17 = arith.constant dense<0.000000e+00> : vector<56x256xf32>
    %35 = tpu.matmul %33, %34, %cst_17 {dimension_numbers = #tpu.dot_dimension_numbers<[1], [0], [0], [1], [0, 0, 1, 1], [], []>} : vector<56x768xbf16>, vector<768x256xbf16>, vector<56x256xf32> -> vector<56x256xf32>
    %36 = arith.addf %32, %35 : vector<56x256xf32>
    %c0_18 = arith.constant 0 : index
    %c0_19 = arith.constant 0 : index
    %37 = vector.load %arg8[%c0_18, %c0_19] : memref<56x256xf32, #tpu.memory_space<vmem>>, vector<56x256xf32>
    tpu.vector_store %arg8[%c0_18, %c0_19], %36 {strides = array<i32>} : memref<56x256xf32, #tpu.memory_space<vmem>>, vector<56x256xf32>,
    %c0_i32_20 = arith.constant 0 : i32
    %38 = arith.cmpi eq, %arg1, %c0_i32_20 : i32
    %39 = arith.extui %38 : i1 to i32
    %c0_i32_21 = arith.constant 0 : i32
    %40 = arith.cmpi ne, %39, %c0_i32_21 : i32
    scf.if %40 {
      %c0_22 = arith.constant 0 : index
      %c0_23 = arith.constant 0 : index
      %41 = vector.load %arg8[%c0_22, %c0_23] : memref<56x256xf32, #tpu.memory_space<vmem>>, vector<56x256xf32>
      %c0_24 = arith.constant 0 : index
      %c0_25 = arith.constant 0 : index
      %42 = vector.load %arg6[%c0_24, %c0_25] : memref<1x256xf32, #tpu.memory_space<vmem>>, vector<1x256xf32>
      %43 = vector.broadcast %42 : vector<1x256xf32> to vector<56x256xf32>
      %44 = arith.subf %41, %43 : vector<56x256xf32>
      %cst_26 = arith.constant 0.000000e+00 : f32
      %45 = vector.broadcast %cst_26 : f32 to vector<56x1xf32>
      %46 = vector.extract_strided_slice %44 {offsets = [0, 0], sizes = [56, 128], strides = [1, 1]} : vector<56x256xf32> to vector<56x128xf32>
      %47 = arith.mulf %46, %46 : vector<56x128xf32>
      %cst_27 = arith.constant dense<0.000000e+00> : vector<56xf32>
      %48 = vector.multi_reduction <add>, %47, %cst_27 [1] : vector<56x128xf32> to vector<56xf32>
      %49 = vector.shape_cast %48 : vector<56xf32> to vector<56x1xf32>
      %cst_28 = arith.constant 9.99999996E-13 : f32
      %50 = vector.broadcast %cst_28 : f32 to vector<56x1xf32>
      %51 = arith.addf %49, %50 : vector<56x1xf32>
      %52 = math.rsqrt %51 : vector<56x1xf32>
      %c0_29 = arith.constant 0 : index
      %c0_30 = arith.constant 0 : index
      %c0_31 = arith.constant 0 : index
      %53 = vector.load %arg5[%c0_29, %c0_30, %c0_31] : memref<2x1x128xf32, #tpu.memory_space<vmem>>, vector<1x1x128xf32>
      %54 = vector.shape_cast %53 : vector<1x1x128xf32> to vector<1x128xf32>
      %55 = vector.broadcast %54 : vector<1x128xf32> to vector<56x128xf32>
      %56 = arith.mulf %46, %55 : vector<56x128xf32>
      %cst_32 = arith.constant dense<0.000000e+00> : vector<56xf32>
      %57 = vector.multi_reduction <add>, %56, %cst_32 [1] : vector<56x128xf32> to vector<56xf32>
      %58 = vector.shape_cast %57 : vector<56xf32> to vector<56x1xf32>
      %59 = arith.mulf %58, %52 : vector<56x1xf32>
      %cst_33 = arith.constant 1.000000e+00 : f32
      %60 = vector.broadcast %cst_33 : f32 to vector<56x1xf32>
      %61 = arith.subf %60, %59 : vector<56x1xf32>
      %cst_34 = arith.constant dense<0.000000e+00> : vector<56xf32>
      %62 = vector.multi_reduction <add>, %61, %cst_34 [1] : vector<56x1xf32> to vector<56xf32>
      %63 = vector.shape_cast %62 : vector<56xf32> to vector<56x1xf32>
      %cst_35 = arith.constant 1.000000e+00 : f32
      %64 = vector.broadcast %cst_35 : f32 to vector<56x1xf32>
      %65 = arith.divf %63, %64 : vector<56x1xf32>
      %c0_36 = arith.constant 0 : index
      %66 = memref.load %arg2[%c0_36] : memref<2xf32, #tpu.memory_space<smem>>
      %67 = vector.broadcast %66 : f32 to vector<56x1xf32>
      %68 = arith.mulf %67, %65 : vector<56x1xf32>
      %69 = arith.addf %45, %68 : vector<56x1xf32>
      %70 = vector.extract_strided_slice %44 {offsets = [0, 128], sizes = [56, 128], strides = [1, 1]} : vector<56x256xf32> to vector<56x128xf32>
      %71 = arith.mulf %70, %70 : vector<56x128xf32>
      %cst_37 = arith.constant dense<0.000000e+00> : vector<56xf32>
      %72 = vector.multi_reduction <add>, %71, %cst_37 [1] : vector<56x128xf32> to vector<56xf32>
      %73 = vector.shape_cast %72 : vector<56xf32> to vector<56x1xf32>
      %cst_38 = arith.constant 9.99999996E-13 : f32
      %74 = vector.broadcast %cst_38 : f32 to vector<56x1xf32>
      %75 = arith.addf %73, %74 : vector<56x1xf32>
      %76 = math.rsqrt %75 : vector<56x1xf32>
      %c1 = arith.constant 1 : index
      %c0_39 = arith.constant 0 : index
      %c0_40 = arith.constant 0 : index
      %77 = vector.load %arg5[%c1, %c0_39, %c0_40] : memref<2x1x128xf32, #tpu.memory_space<vmem>>, vector<1x1x128xf32>
      %78 = vector.shape_cast %77 : vector<1x1x128xf32> to vector<1x128xf32>
      %79 = vector.broadcast %78 : vector<1x128xf32> to vector<56x128xf32>
      %80 = arith.mulf %70, %79 : vector<56x128xf32>
      %cst_41 = arith.constant dense<0.000000e+00> : vector<56xf32>
      %81 = vector.multi_reduction <add>, %80, %cst_41 [1] : vector<56x128xf32> to vector<56xf32>
      %82 = vector.shape_cast %81 : vector<56xf32> to vector<56x1xf32>
      %83 = arith.mulf %82, %76 : vector<56x1xf32>
      %cst_42 = arith.constant 1.000000e+00 : f32
      %84 = vector.broadcast %cst_42 : f32 to vector<56x1xf32>
      %85 = arith.subf %84, %83 : vector<56x1xf32>
      %cst_43 = arith.constant dense<0.000000e+00> : vector<56xf32>
      %86 = vector.multi_reduction <add>, %85, %cst_43 [1] : vector<56x1xf32> to vector<56xf32>
      %87 = vector.shape_cast %86 : vector<56xf32> to vector<56x1xf32>
      %cst_44 = arith.constant 1.000000e+00 : f32
      %88 = vector.broadcast %cst_44 : f32 to vector<56x1xf32>
      %89 = arith.divf %87, %88 : vector<56x1xf32>
      %c1_45 = arith.constant 1 : index
      %90 = memref.load %arg2[%c1_45] : memref<2xf32, #tpu.memory_space<smem>>
      %91 = vector.broadcast %90 : f32 to vector<56x1xf32>
      %92 = arith.mulf %91, %89 : vector<56x1xf32>
      %93 = arith.addf %69, %92 : vector<56x1xf32>
      %94 = vector.shape_cast %93 : vector<56x1xf32> to vector<1x56x1xf32>
      %95 = tpu.iota {dimensions = array<i32: 0>} : vector<56x1xi32>
      %c50_i32 = arith.constant 50 : i32
      %96 = vector.broadcast %c50_i32 : i32 to vector<56x1xi32>
      %97 = arith.cmpi slt, %95, %96 : vector<56x1xi32>
      %cst_46 = arith.constant 0.000000e+00 : f32
      %98 = vector.shape_cast %97 : vector<56x1xi1> to vector<1x56x1xi1>
      %99 = vector.broadcast %cst_46 : f32 to vector<1x56x1xf32>
      %100 = arith.select %98, %94, %99 : vector<1x56x1xi1>, vector<1x56x1xf32>
      %cst_47 = arith.constant dense<0.000000e+00> : vector<1x1xf32>
      %101 = vector.multi_reduction <add>, %100, %cst_47 [1] : vector<1x56x1xf32> to vector<1x1xf32>
      %cst_48 = arith.constant 2.000000e-02 : f32
      %102 = vector.broadcast %cst_48 : f32 to vector<1x1xf32>
      %103 = arith.mulf %101, %102 : vector<1x1xf32>
      %cst_49 = arith.constant 0.000000e+00 : f32
      %104 = vector.broadcast %cst_49 : f32 to vector<7x1xf32>
      %105 = tpu.concatenate %103, %104 in 0 : vector<1x1xf32>, vector<7x1xf32> -> vector<8x1xf32>
      %106 = vector.shape_cast %105 : vector<8x1xf32> to vector<8x1xf32>
      %107 = vector.broadcast %106 : vector<8x1xf32> to vector<8x128xf32>
      %c0_50 = arith.constant 0 : index
      %c0_51 = arith.constant 0 : index
      %c0_52 = arith.constant 0 : index
      %108 = vector.load %arg7[%c0_50, %c0_51, %c0_52] : memref<1x8x128xf32, #tpu.memory_space<vmem>>, vector<1x8x128xf32>
      %109 = vector.shape_cast %108 : vector<1x8x128xf32> to vector<8x128xf32>
      %110 = vector.shape_cast %107 : vector<8x128xf32> to vector<1x8x128xf32>
      tpu.vector_store %arg7[%c0_50, %c0_51, %c0_52], %110 {strides = array<i32>} : memref<1x8x128xf32, #tpu.memory_space<vmem>>, vector<1x8x128xf32>,
    } else {
    }
    return
  }
  func.func @transform_0(%arg0: i32, %arg1: i32) -> i32 {
    %c0_i32 = arith.constant 0 : i32
    %c0_i32_0 = arith.constant 0 : i32
    return %c0_i32 : i32
  }
  func.func @transform_1(%arg0: i32, %arg1: i32) -> (i32, i32, i32) {
    %c0_i32 = arith.constant 0 : i32
    %c0_i32_0 = arith.constant 0 : i32
    return %arg0, %c0_i32, %arg1 : i32, i32, i32
  }
  func.func @transform_2(%arg0: i32, %arg1: i32) -> (i32, i32) {
    %c0_i32 = arith.constant 0 : i32
    %c0_i32_0 = arith.constant 0 : i32
    return %arg1, %c0_i32 : i32, i32
  }
  func.func @transform_3(%arg0: i32, %arg1: i32) -> (i32, i32, i32) {
    %c0_i32 = arith.constant 0 : i32
    %c0_i32_0 = arith.constant 0 : i32
    %c0_i32_1 = arith.constant 0 : i32
    %c0_i32_2 = arith.constant 0 : i32
    return %c0_i32, %c0_i32_0, %c0_i32_1 : i32, i32, i32
  }
  func.func @transform_4(%arg0: i32, %arg1: i32) -> (i32, i32) {
    %c0_i32 = arith.constant 0 : i32
    %c0_i32_0 = arith.constant 0 : i32
    %c0_i32_1 = arith.constant 0 : i32
    return %c0_i32, %c0_i32_0 : i32, i32
  }
  func.func @transform_5(%arg0: i32, %arg1: i32) -> (i32, i32, i32) {
    %c0_i32 = arith.constant 0 : i32
    %c0_i32_0 = arith.constant 0 : i32
    %c0_i32_1 = arith.constant 0 : i32
    return %arg0, %c0_i32, %c0_i32_0 : i32, i32, i32
  }
}

</mosaic_0001>

<bundles_post_ra>
// kernel: tpu_custom_call.1
= control target key start
LH: loop header
LB: loop body
LE: loop exit
PB: predicated region body
PF: predicated region fallthrough
CT: control target
= control target key end

     0   :  { %10 = vsyncpa [#allocation7], 0  ;;  %s4036_s0 = inlined_call_operand.hbm [shape: f32[2], index: 0, kind: input, shape index: {}]   ;;  %s4037_s1 = inlined_call_operand.hbm [shape: f32[2,1,768], index: 1, kind: input, shape index: {}]   ;;  %s4038_s2 = inlined_call_operand.hbm [shape: bf16[768,256], index: 2, kind: input, shape index: {}]   ;;  %s4039_s3 = inlined_call_operand.vmem [shape: f32[2,1,128], index: 3, kind: input, shape index: {}]   ;;  %s4040_s4 = inlined_call_operand.hbm [shape: f32[1,256], index: 4, kind: input, shape index: {}]   ;;  %s4041_s5 = inlined_call_operand.hbm [shape: f32[2,8,128], index: 5, kind: output, shape index: {}]  }
   0x1   :  { %11 = vsyncpa [#allocation5], 0 }
   0x2   :  { %13 = vsyncpa [#allocation5 + $0x1], 0 }
   0x3   :  { %14 = vsyncpa [#allocation10], 0 }
   0x4   :  { %15 = vsyncpa [#allocation6], 0 }
   0x5   :  { %17 = vsyncpa [#allocation6 + $0x1], 0  ;;  %s3173_s18 = smov 0   ;;  %s3175_s19 = smov 0  }
   0x6   :  { %s3177_s20 = smov 0   ;;  %s3179_s21 = smov 0  }
   0x7   :  { %s3181_s22 = smov 0   ;;  %s3183_s23 = smov 0  }
   0x8 LB: > { %s208_s26 = sshll.u32 %s4038_s2, 4  ;;  %s2214_s27 = sadd.s32 4294967295, %s3135_s23   ;;  %s3135_s23 = sphi %s3183_s23, %s23_s23   ;;  %s3131_s22 = sphi %s3181_s22, %s4066_s22   ;;  %s3127_s21 = sphi %s3179_s21, %s4065_s21   ;;  %s3123_s20 = sphi %s3177_s20, %s4064_s20   ;;  %s3119_s19 = sphi %s3175_s19, %s4063_s19   ;;  %s3115_s18 = sphi %s3173_s18, %s4062_s18   ;;  %s209_s26 = int_to_ptr.hbm [resolvable:$true] %s208_s26 }
   0x9   : > { %p2216_p0 = scmp.ge.s32.totalorder %s3135_s23, 1  ;;  %p3210_p1 = scmp.eq.s32.totalorder %s2214_s27, 0 }
   0xa   : > { %p183_p2 = scmp.lt.s32.totalorder %s3135_s23, 3  ;;  %s3137_s30 = smov [#allocation9]  }
   0xb   : > { %s210_s6 = sshll.u32 %s3137_s30, 4  ;;  %p2220_p5 = scmp.ge.s32.totalorder %s3135_s23, 2  ;;  %s211_s6 = int_to_ptr.vmem [resolvable:$true] %s210_s6 }
   0xc   : > { %p3215_p3 = pnand %p2216_p0, %p183_p2  ;;  %s195_s9 = sshll.u32 %s4036_s0, 4  ;;  %s196_s9 = int_to_ptr.hbm [resolvable:$true] %s195_s9 }
   0xd   : > { %s3138_s10 = smov 128   ;;  %s3139_s11 = smov 8  }
   0xe   : > { %p2828_p4 = pneg %p3215_p3  ;;  %s3140_s12 = smov [#allocation4]  }
   0xf   : > { %s226_s15 = sshll.u32 %s4040_s4, 4  ;;  %s3141_s16 = smov [#allocation11]   ;;  %s227_s15 = int_to_ptr.hbm [resolvable:$true] %s226_s15 }
  0x10   : > { %p2829_p6 = pnand %p2828_p4, %p3210_p1  ;;  %s228_s17 = sshll.u32 %s3141_s16, 4  ;;  %s229_s17 = int_to_ptr.vmem [resolvable:$true] %s228_s17 }
  0x11   : > { %s2215_s24 = sadd.s32 4294967294, %s3135_s23   ;;  %s35_s25 = sadd.s32 1, %s3131_s22 }
  0x12   : > { %2834 = dma.hbm_to_vmem [thread:$0]  (!%p2829_p6), %s209_s26, 12288, %s211_s6, [#allocation10], %s3138_s10, %s3138_s10, %s3139_s11  }
  0x13   : > { %2831 = dma.hbm_to_smem (!%p2829_p6), %s196_s9, 16, %s3140_s12, [#allocation7]  }
  0x14   : > { %2837 = dma.hbm_to_vmem [thread:$0]  (!%p2829_p6), %s227_s15, 32, %s229_s17, [#allocation10]  }
  0x15   : > { %s65_s30 = sadd.s32 1, %s3123_s20  ;;  %p37_p7 = scmp.ge.s32.totalorder %s35_s25, 2 }
  0x16   : > { %p72_p8 = scmp.ne.s32.totalorder %s3123_s20, %s3119_s19  ;;  %p73_p9 = scmp.eq.s32.totalorder %s3135_s23, 0 }
  0x17   : > { %p78_p10 = scmp.ne.s32.totalorder %s3119_s19, %s3115_s18  ;;  %s4068_s25 = smov (%p37_p7, %s35_s25), 0 }
  0x18   : > { %p3240_p11 = por %p73_p9, %p72_p8  ;;  %s60_s7 = ssub.s32 %s3131_s22, %s4068_s25 }
  0x19   : > { %p3246_p12 = por %p3210_p1, %p78_p10  ;;  %p170_p13 = scmp.eq.s32.totalorder %s2214_s27, 1 }
  0x1a   : > { %p63_p0 = scmp.eq.s32.totalorder %s60_s7, 0  ;;  %p176_p2 = scmp.eq.s32.totalorder %s2215_s24, 1 }
  0x1b   : > { %p3254_p4 = por %p170_p13, %p72_p8  ;;  %p2849_p6 = scmp.lt.s32.totalorder %s3135_s23, 2 }
  0x1c   : > { %s3260_s9 = scalar_select %p63_p0, %s3123_s20, %s65_s30  }
  0x1d   : > { %p3262_p7 = por %p176_p2, %p78_p10  ;;  %s239_s11 = sand.u32 1, %s3123_s20  }
  0x1e   : > { %s2809_s12 = smul.u32 6, %s239_s11  ;;  %p2839_p9 = pnand %p2849_p6, %p3240_p11 }
  0x1f   : > { %s2810_s13 = smul.u32 6, %s3131_s22  ;;  %s240_s30 = scalar_lea.sflag [#allocation5], %s239_s11 }
  0x20   : > { %s243_s16 = scalar_lea.vmem [#allocation8], %s2809_s12  ;;  %262 = sbr.rel (%p3215_p3) target bundleno = 703 (0x2bf), region = 40 }
  0x21   : > { %s249_s15 = scalar_lea.hbm %s4037_s1, %s2810_s13  ;;  %s253_s17 = sshll.u32 %s243_s16, 4  ;;  %s254_s17 = int_to_ptr.vmem [resolvable:$true] %s253_s17 }
  0x22   : > { %s251_s24 = sshll.u32 %s249_s15, 4  ;;  %s252_s24 = int_to_ptr.hbm [resolvable:$true] %s251_s24 }
  0x23   : > { %2841 = dma.hbm_to_vmem [thread:$0]  (!%p2839_p9), %s252_s24, 96, %s254_s17, %s240_s30  }
  0x25   : > { %3098 = dma.done.wait (%p3210_p1), [#allocation7], 16  }
  0x26   : > { %3100 = vsyncadd (%p3210_p1), [#allocation7], 4294967280  ;;  %s3280_s26 = sand.u32 1, %s3119_s19  }
  0x27   : > { %s2811_s7 = smul.u32 6, %s3280_s26  ;;  %s270_s12 = scalar_lea.sflag [#allocation5], %s3280_s26 }
  0x29   : > { %s3284_s13 = scalar_lea.vmem [#allocation8], %s2811_s7 }
  0x2a   : > { %3102 = dma.done.wait (%p3246_p12), %s270_s12, 96  }
  0x2b   : > { %3104 = vsyncadd (%p3246_p12), %s270_s12, 4294967200 }
  0x2c   : > { %3106 = dma.done.wait (%p3210_p1), [#allocation10], 12320  }
  0x2d   : > { %3108 = vsyncadd (%p3210_p1), [#allocation10], 4294954976 }
  0x2e   : > { %289 = sfence }
  0x2f   : > { %v2363_v0 = vld [vmem:[#allocation9 + $0x70] sm:$0xf]  ;;  %v2728_v1 = vld [vmem:[#allocation9 + $0x74] sm:$0xf0]  ;;  %v2355_v11 = vld [vmem:[#allocation9 + $0x60] sm:$0xf] }
  0x30   : > { %v2427_v2 = vld [vmem:[#allocation9 + $0xf0] sm:$0xf]  ;;  %v2364_v3 = vor.u32 %v2728_v1, %v2363_v0  ;;  %v2744_v4 = vld [vmem:[#allocation9 + $0xf4] sm:$0xf0]  ;;  %v2726_v13 = vld [vmem:[#allocation9 + $0x64] sm:$0xf0] }
  0x31   : > { %v2491_v5 = vld [vmem:[#allocation9 + $0x170] sm:$0xf]  ;;  %v2760_v6 = vld [vmem:[#allocation9 + $0x174] sm:$0xf0]  ;;  %v2428_v7 = vor.u32 %v2744_v4, %v2427_v2  ;;  %v2419_v14 = vld [vmem:[#allocation9 + $0xe0] sm:$0xf]  ;;  %v2356_v16 = vor.u32 %v2726_v13, %v2355_v11  ;;  %v333_v2 = vlaneseq }
  0x32   : > { %v2492_v8 = vor.u32 %v2760_v6, %v2491_v5  ;;  %v2555_v9 = vld [vmem:[#allocation9 + $0x1f0] sm:$0xf]  ;;  %v2776_v10 = vld [vmem:[#allocation9 + $0x1f4] sm:$0xf0]  ;;  %1328 = vmatpush.bf16.msra.mxu0 %v2364_v3  ;;  %v2742_v15 = vld [vmem:[#allocation9 + $0xe4] sm:$0xf0] }
  0x33   : > { %v2556_v12 = vor.u32 %v2776_v10, %v2555_v9  ;;  %1356 = vmatpush.bf16.msra.mxu1 %v2428_v7  ;;  %v2420_v17 = vor.u32 %v2742_v15, %v2419_v14  ;;  %v2483_v18 = vld [vmem:[#allocation9 + $0x160] sm:$0xf]  ;;  %v2758_v19 = vld [vmem:[#allocation9 + $0x164] sm:$0xf0]  ;;  %v2347_v23 = vld [vmem:[#allocation9 + $0x50] sm:$0xf] }
  0x34   : > { %1384 = vmatpush.bf16.msra.mxu2 %v2492_v8  ;;  %v2547_v20 = vld [vmem:[#allocation9 + $0x1e0] sm:$0xf]  ;;  %v2484_v21 = vor.u32 %v2758_v19, %v2483_v18  ;;  %v2774_v22 = vld [vmem:[#allocation9 + $0x1e4] sm:$0xf0]  ;;  %v2724_v24 = vld [vmem:[#allocation9 + $0x54] sm:$0xf0] }
  0x35   : > { %1412 = vmatpush.bf16.msra.mxu3 %v2556_v12  ;;  %v2548_v25 = vor.u32 %v2774_v22, %v2547_v20  ;;  %v2411_v26 = vld [vmem:[#allocation9 + $0xd0] sm:$0xf]  ;;  %v2740_v27 = vld [vmem:[#allocation9 + $0xd4] sm:$0xf0]  ;;  %v2348_v29 = vor.u32 %v2724_v24, %v2347_v23  ;;  %v2339_v35 = vld [vmem:[#allocation9 + $0x40] sm:$0xf] }
  0x36   : > { %v2475_v28 = vld [vmem:[#allocation9 + $0x150] sm:$0xf]  ;;  %1329 = vmatpush.bf16.msra.mxu0 %v2356_v16  ;;  %v2756_v30 = vld [vmem:[#allocation9 + $0x154] sm:$0xf0]  ;;  %v2412_v33 = vor.u32 %v2740_v27, %v2411_v26  ;;  %v2722_v36 = vld [vmem:[#allocation9 + $0x44] sm:$0xf0] }
  0x37   : > { %v2539_v31 = vld [vmem:[#allocation9 + $0x1d0] sm:$0xf]  ;;  %v2772_v32 = vld [vmem:[#allocation9 + $0x1d4] sm:$0xf0]  ;;  %1357 = vmatpush.bf16.msra.mxu1 %v2420_v17  ;;  %v2476_v34 = vor.u32 %v2756_v30, %v2475_v28  ;;  %v2403_v37 = vld [vmem:[#allocation9 + $0xc0] sm:$0xf]  ;;  %v2340_v44 = vor.u32 %v2722_v36, %v2339_v35 }
  0x38   : > { %1385 = vmatpush.bf16.msra.mxu2 %v2484_v21  ;;  %v2540_v38 = vor.u32 %v2772_v32, %v2539_v31  ;;  %v2738_v39 = vld [vmem:[#allocation9 + $0xc4] sm:$0xf0]  ;;  %v2467_v40 = vld [vmem:[#allocation9 + $0x140] sm:$0xf]  ;;  %v2331_v47 = vld [vmem:[#allocation9 + $0x30] sm:$0xf] }
  0x39   : > { %1413 = vmatpush.bf16.msra.mxu3 %v2548_v25  ;;  %v2754_v41 = vld [vmem:[#allocation9 + $0x144] sm:$0xf0]  ;;  %v2531_v42 = vld [vmem:[#allocation9 + $0x1c0] sm:$0xf]  ;;  %v2404_v45 = vor.u32 %v2738_v39, %v2403_v37  ;;  %v2720_v48 = vld [vmem:[#allocation9 + $0x34] sm:$0xf0] }
  0x3a   : > { %v2770_v43 = vld [vmem:[#allocation9 + $0x1c4] sm:$0xf0]  ;;  %1330 = vmatpush.bf16.msra.mxu0 %v2348_v29  ;;  %v2468_v46 = vor.u32 %v2754_v41, %v2467_v40  ;;  %v2395_v49 = vld [vmem:[#allocation9 + $0xb0] sm:$0xf]  ;;  %v2736_v51 = vld [vmem:[#allocation9 + $0xb4] sm:$0xf0]  ;;  %v2332_v56 = vor.u32 %v2720_v48, %v2331_v47 }
  0x3b   : > { %1358 = vmatpush.bf16.msra.mxu1 %v2412_v33  ;;  %v2532_v50 = vor.u32 %v2770_v43, %v2531_v42  ;;  %v2459_v52 = vld [vmem:[#allocation9 + $0x130] sm:$0xf]  ;;  %v2752_v53 = vld [vmem:[#allocation9 + $0x134] sm:$0xf0]  ;;  %v2396_v57 = vor.u32 %v2736_v51, %v2395_v49  ;;  %v2323_v59 = vld [vmem:[#allocation9 + $0x20] sm:$0xf] }
  0x3c   : > { %1386 = vmatpush.bf16.msra.mxu2 %v2476_v34  ;;  %v2523_v54 = vld [vmem:[#allocation9 + $0x1b0] sm:$0xf]  ;;  %v2768_v55 = vld [vmem:[#allocation9 + $0x1b4] sm:$0xf0]  ;;  %v2460_v58 = vor.u32 %v2752_v53, %v2459_v52  ;;  %v2718_v60 = vld [vmem:[#allocation9 + $0x24] sm:$0xf0] }
  0x3d   : > { %1414 = vmatpush.bf16.msra.mxu3 %v2540_v38  ;;  %v2387_v61 = vld [vmem:[#allocation9 + $0xa0] sm:$0xf]  ;;  %v2524_v62 = vor.u32 %v2768_v55, %v2523_v54  ;;  %v2734_v63 = vld [vmem:[#allocation9 + $0xa4] sm:$0xf0]  ;;  %v2315_v5 = vld [vmem:[#allocation9 + $0x10] sm:$0xf]  ;;  %v2324_v6 = vor.u32 %v2718_v60, %v2323_v59 }
  0x3e   : > { %1331 = vmatpush.bf16.msra.mxu0 %v2340_v44  ;;  %v2451_v0 = vld [vmem:[#allocation9 + $0x120] sm:$0xf]  ;;  %v2750_v1 = vld [vmem:[#allocation9 + $0x124] sm:$0xf0]  ;;  %v2716_v7 = vld [vmem:[#allocation9 + $0x14] sm:$0xf0]  ;;  %v2388_v10 = vor.u32 %v2734_v63, %v2387_v61 }
  0x3f   : > { %1359 = vmatpush.bf16.msra.mxu1 %v2404_v45  ;;  %v2515_v3 = vld [vmem:[#allocation9 + $0x1a0] sm:$0xf]  ;;  %v2766_v4 = vld [vmem:[#allocation9 + $0x1a4] sm:$0xf0]  ;;  %v2379_v8 = vld [vmem:[#allocation9 + $0x90] sm:$0xf]  ;;  %v2452_v11 = vor.u32 %v2750_v1, %v2451_v0  ;;  %v2316_v19 = vor.u32 %v2716_v7, %v2315_v5 }
  0x40   : > { %1387 = vmatpush.bf16.msra.mxu2 %v2468_v46  ;;  %v2732_v9 = vld [vmem:[#allocation9 + $0x94] sm:$0xf0]  ;;  %v2443_v12 = vld [vmem:[#allocation9 + $0x110] sm:$0xf]  ;;  %v2516_v15 = vor.u32 %v2766_v4, %v2515_v3  ;;  %v3297_v18 = vshrl.u32 %v333_v2, 7  ;;  %s1873_s14 = sld [smem:[#allocation4]] }
  0x41   : > { %1415 = vmatpush.bf16.msra.mxu3 %v2532_v50  ;;  %v2748_v13 = vld [vmem:[#allocation9 + $0x114] sm:$0xf0]  ;;  %v2507_v14 = vld [vmem:[#allocation9 + $0x190] sm:$0xf]  ;;  %v2307_v20 = vld [vmem:[#allocation9] sm:$0xf]  ;;  %v2380_v32 = vor.u32 %v2732_v9, %v2379_v8 }
  0x42   : > { %1332 = vmatpush.bf16.msra.mxu0 %v2332_v56  ;;  %v2764_v16 = vld [vmem:[#allocation9 + $0x194] sm:$0xf0]  ;;  %v2714_v21 = vld [vmem:[#allocation9 + $0x4] sm:$0xf0]  ;;  %v2371_v22 = vld [vmem:[#allocation9 + $0x80] sm:$0xf]  ;;  %v341_v29 = vcvt.s32.f32 %v3297_v18  ;;  %v2444_v33 = vor.u32 %v2748_v13, %v2443_v12 }
  0x43   : > { %1360 = vmatpush.bf16.msra.mxu1 %v2396_v57  ;;  %v3295_v17 = vld [vmem:[%s3284_s13] sm:$0x3f]  ;;  %v2730_v23 = vld [vmem:[#allocation9 + $0x84] sm:$0xf0]  ;;  %v2435_v24 = vld [vmem:[#allocation9 + $0x100] sm:$0xf]  ;;  %v2508_v38 = vor.u32 %v2764_v16, %v2507_v14  ;;  %v2308_v47 = vor.u32 %v2714_v21, %v2307_v20 }
  0x44   : > { %1388 = vmatpush.bf16.msra.mxu2 %v2460_v58  ;;  %v2746_v25 = vld [vmem:[#allocation9 + $0x104] sm:$0xf0]  ;;  %v3299_v26 = vld [vmem:[#allocation9 + $0x180] sm:$0xf]  ;;  %v335_v28 = vadd.s32 8, %v3297_v18  ;;  %v3304_v30 = vperm.slane %v3295_v17, 0  ;;  %v2372_v52 = vor.u32 %v2730_v23, %v2371_v22 }
  0x45   : > { %1416 = vmatpush.bf16.msra.mxu3 %v2524_v62  ;;  %v2762_v27 = vld [vmem:[#allocation9 + $0x184] sm:$0xf0]  ;;  %v3307_v31 = vperm.slane %v3295_v17, 1  ;;  %v3310_v34 = vperm.slane %v3295_v17, 2  ;;  %v2727_v35 = vld [vmem:[#allocation9 + $0x74] sm:$0xf]  ;;  %v2436_v53 = vor.u32 %v2746_v25, %v2435_v24 }
  0x46   : > { %1333 = vmatpush.bf16.msra.mxu0 %v2324_v6  ;;  %v2365_v36 = vld [vmem:[#allocation9 + $0x78] sm:$0xf0]  ;;  %v336_v37 = vadd.s32 16, %v3297_v18  ;;  %v342_v39 = vcvt.s32.f32 %v335_v28  ;;  %v348_v40 = vmul.f32 0.02, %v341_v29  ;;  %v3314_v50 = vperm.slane %v3295_v17, 3 }
  0x47   : > { %1361 = vmatpush.bf16.msra.mxu1 %v2388_v10  ;;  %v2619_v41 = vld [vmem:[#allocation9 + $0x270] sm:$0xf]  ;;  %v2792_v42 = vld [vmem:[#allocation9 + $0x274] sm:$0xf0]  ;;  %v2743_v43 = vld [vmem:[#allocation9 + $0xf4] sm:$0xf]  ;;  %v2500_v54 = vor.u32 %v2762_v27, %v3299_v26  ;;  %v2368_v62 = vor.u32 %v2727_v35, %v2365_v36 }
  0x48   : > { %1389 = vmatpush.bf16.msra.mxu2 %v2452_v11  ;;  %v2429_v44 = vld [vmem:[#allocation9 + $0xf8] sm:$0xf0]  ;;  %v2683_v45 = vld [vmem:[#allocation9 + $0x2f0] sm:$0xf]  ;;  %v2808_v46 = vld [vmem:[#allocation9 + $0x2f4] sm:$0xf0]  ;;  %v343_v58 = vcvt.s32.f32 %v336_v37  ;;  %v2620_v63 = vor.u32 %v2792_v42, %v2619_v41 }
  0x49   : > { %1417 = vmatpush.bf16.msra.mxu3 %v2516_v15  ;;  %v349_v48 = vmul.f32 0.02, %v342_v39  ;;  %v2226_v49 = vadd.f32 -0.5, %v348_v40  ;;  %v2725_v51 = vld [vmem:[#allocation9 + $0x64] sm:$0xf]  ;;  %v2432_v0 = vor.u32 %v2743_v43, %v2429_v44  ;;  %v2684_v1 = vor.u32 %v2808_v46, %v2683_v45  ;;  %s3877_s27 = sld [smem:[#allocation4 + $0x1]] }
  0x4a   : > { %1334 = vmatpush.bf16.msra.mxu0 %v2316_v19  ;;  %v2357_v55 = vld [vmem:[#allocation9 + $0x68] sm:$0xf0]  ;;  %v2611_v56 = vld [vmem:[#allocation9 + $0x260] sm:$0xf]  ;;  %v2790_v57 = vld [vmem:[#allocation9 + $0x264] sm:$0xf0] }
  0x4b   : > { %1362 = vmatpush.bf16.msra.mxu1 %v2380_v32  ;;  %v2227_v59 = vadd.f32 -0.5, %v349_v48  ;;  %v362_v60 = vmul.f32 0.2, %v2226_v49  ;;  %v3317_v61 = vmul.f32 0.1, %v2226_v49  ;;  %v2360_v2 = vor.u32 %v2725_v51, %v2357_v55  ;;  %s2225_s15 = sshll.u32 %s3280_s26, 3 }
  0x4c   : > { %1390 = vmatpush.bf16.msra.mxu2 %v2444_v33  ;;  %v2741_v3 = vld [vmem:[#allocation9 + $0xe4] sm:$0xf]  ;;  %v2421_v4 = vld [vmem:[#allocation9 + $0xe8] sm:$0xf0]  ;;  %v2675_v5 = vld [vmem:[#allocation9 + $0x2e0] sm:$0xf]  ;;  %v2612_v9 = vor.u32 %v2790_v57, %v2611_v56 }
  0x4d   : > { %1418 = vmatpush.bf16.msra.mxu3 %v2508_v38  ;;  %v363_v6 = vmul.f32 0.2, %v2227_v59  ;;  %v3319_v7 = vadd.f32 1.0, %v362_v60  ;;  %v3321_v8 = vmul.f32 0.1, %v2227_v59  ;;  %v2424_v10 = vor.u32 %v2741_v3, %v2421_v4  ;;  %s2692_s16 = sshll.u32 %s3127_s21, 3 }
  0x4e   : > { %1335 = vmatpush.bf16.msra.mxu0 %v2308_v47  ;;  %v2806_v11 = vld [vmem:[#allocation9 + $0x2e4] sm:$0xf0]  ;;  %v337_v12 = vadd.s32 24, %v3297_v18  ;;  %v350_v13 = vmul.f32 0.02, %v343_v58  ;;  %v3325_v14 = vadd.s32 32, %v3297_v18  ;;  %s2096_s30 = scalar_lea.hbm %s4041_s5, %s2692_s16 }
  0x4f   : > { %1363 = vmatpush.bf16.msra.mxu1 %v2372_v52  ;;  %v3327_v15 = vadd.f32 1.0, %v363_v6  ;;  %v396_v16 = vmul.f32 %v3304_v30, %v3319_v7  ;;  %v397_v19 = vmul.f32 %v3307_v31, %v3319_v7  ;;  %v398_v20 = vmul.f32 %v3310_v34, %v3319_v7  ;;  %v2349_v58 = vld [vmem:[#allocation9 + $0x58] sm:$0xf0]  ;;  %s311_s7 = scalar_lea.vmem [#allocation12], %s2225_s15  ;;  %s2100_s13 = sshll.u32 %s2096_s30, 4  ;;  %s2101_s13 = int_to_ptr.hbm [resolvable:$true] %s2100_s13 }
  0x50   : > { %1391 = vmatpush.bf16.msra.mxu2 %v2436_v53  ;;  %v399_v21 = vmul.f32 %v3314_v50, %v3319_v7  ;;  %v2676_v22 = vor.u32 %v2806_v11, %v2675_v5  ;;  %v344_v23 = vcvt.s32.f32 %v337_v12  ;;  %v2228_v24 = vadd.f32 -0.5, %v350_v13  ;;  %v2723_v53 = vld [vmem:[#allocation9 + $0x54] sm:$0xf]  ;;  %v2788_v5 = vld [vmem:[#allocation9 + $0x254] sm:$0xf0]  ;;  %s2098_s12 = sshll.u32 %s311_s7, 4  ;;  %s2099_s12 = int_to_ptr.vmem [resolvable:$true] %s2098_s12 }
  0x51   : > { %1419 = vmatpush.bf16.msra.mxu3 %v2500_v54  ;;  %v402_v25 = vmul.f32 %v3304_v30, %v3327_v15  ;;  %v403_v26 = vmul.f32 %v3307_v31, %v3327_v15  ;;  %v438_v27 = vadd.f32 %v396_v16, %v3317_v61  ;;  %v439_v28 = vadd.f32 %v397_v19, %v3317_v61  ;;  %v2739_v11 = vld [vmem:[#allocation9 + $0xd4] sm:$0xf]  ;;  %v2413_v12 = vld [vmem:[#allocation9 + $0xd8] sm:$0xf0]  ;;  %s2086_s28 = scalar_lea.sflag [#allocation6], %s3280_s26  ;;  %s3059_s29 = sshra.s32 %s2101_s13, 4  ;;  %s3060_s29 = int_to_ptr.hbm [resolvable:$true] %s3059_s29 }
  0x52   : > { %1440 = vmatpush.bf16.msrb.mxu0 %v2620_v63  ;;  %v404_v29 = vmul.f32 %v3310_v34, %v3327_v15  ;;  %v405_v32 = vmul.f32 %v3314_v50, %v3327_v15  ;;  %v440_v33 = vadd.f32 %v398_v20, %v3317_v61  ;;  %v441_v35 = vadd.f32 %v399_v21, %v3317_v61  ;;  %s3061_s6 = scalar_lea.hbm %s3060_s29, 8  ;;  %p3066_p10 = scmp.lt.s32.totalorder %s3060_s29, %s4041_s5 }
  0x53   : > { %1468 = vmatpush.bf16.msrb.mxu1 %v2684_v1  ;;  %v444_v36 = vadd.f32 %v402_v25, %v3321_v8  ;;  %v445_v37 = vadd.f32 %v403_v26, %v3321_v8  ;;  %v480_v38 = vmax.f32 %v438_v27, 0.0  ;;  %v481_v39 = vmax.f32 %v439_v28, 0.0  ;;  %v2667_v25 = vld [vmem:[#allocation9 + $0x2d0] sm:$0xf]  ;;  %v2804_v26 = vld [vmem:[#allocation9 + $0x2d4] sm:$0xf0]  ;;  %p3062_p1 = scmp.ne.s32.totalorder %s3060_s29, %s3061_s6 }
  0x54   : > { %1496 = vmatpush.bf16.msrb.mxu2 %v2368_v62  ;;  %v446_v40 = vadd.f32 %v404_v29, %v3321_v8  ;;  %v447_v41 = vadd.f32 %v405_v32, %v3321_v8  ;;  %v482_v42 = vmax.f32 %v440_v33, 0.0  ;;  %v483_v43 = vmax.f32 %v441_v35, 0.0  ;;  %v2721_v29 = vld [vmem:[#allocation9 + $0x44] sm:$0xf]  ;;  %v2341_v32 = vld [vmem:[#allocation9 + $0x48] sm:$0xf0] }
  0x55   : > { %1524 = vmatpush.bf16.msrb.mxu3 %v2432_v0  ;;  %v486_v44 = vmax.f32 %v444_v36, 0.0  ;;  %v487_v45 = vmax.f32 %v445_v37, 0.0  ;;  %v522_v46 = vmin.f32 %v480_v38, 1.0  ;;  %v523_v47 = vmin.f32 %v481_v39, 1.0  ;;  %v2603_v0 = vld [vmem:[#allocation9 + $0x250] sm:$0xf]  ;;  %p3063_p3 = pnand %p3062_p1, %p3254_p4 }
  0x56   : > { %1441 = vmatpush.bf16.msrb.mxu0 %v2612_v9  ;;  %v488_v48 = vmax.f32 %v446_v40, 0.0  ;;  %v489_v49 = vmax.f32 %v447_v41, 0.0  ;;  %v524_v51 = vmin.f32 %v482_v42, 1.0  ;;  %v525_v52 = vmin.f32 %v483_v43, 1.0  ;;  %v2595_v40 = vld [vmem:[#allocation9 + $0x240] sm:$0xf] }
  0x57   : > { %1469 = vmatpush.bf16.msrb.mxu1 %v2676_v22  ;;  %v528_v54 = vmin.f32 %v486_v44, 1.0  ;;  %v529_v55 = vmin.f32 %v487_v45, 1.0  ;;  %v564_v56 = vpack.c.bf16 %v523_v47, %v522_v46  ;;  %v351_v57 = vmul.f32 0.02, %v344_v23  ;;  %v2786_v41 = vld [vmem:[#allocation9 + $0x244] sm:$0xf0]  ;;  %p3064_p8 = pneg %p3063_p3 }
  0x58   : > { %1497 = vmatpush.bf16.msrb.mxu2 %v2360_v2  ;;  %v530_v59 = vmin.f32 %v488_v48, 1.0  ;;  %v531_v60 = vmin.f32 %v489_v49, 1.0  ;;  %v565_v62 = vpack.c.bf16 %v525_v52, %v524_v51  ;;  %v364_v63 = vmul.f32 0.2, %v2228_v24  ;;  %v2737_v42 = vld [vmem:[#allocation9 + $0xc4] sm:$0xf] }
  0x59   : > { %1525 = vmatpush.bf16.msrb.mxu3 %v2424_v10  ;;  %v567_v1 = vpack.c.bf16 %v529_v55, %v528_v54  ;;  %585 = vst [vmem:[#allocation3] sm:$0xff] %v564_v56  ;;  %v2229_v2 = vadd.f32 -0.5, %v351_v57  ;;  %v3353_v3 = vmul.f32 0.1, %v2228_v24  ;;  %v2352_v4 = vor.u32 %v2723_v53, %v2349_v58  ;;  %v2405_v46 = vld [vmem:[#allocation9 + $0xc8] sm:$0xf0] }
  0x5a   : > { %v568_v6 = vpack.c.bf16 %v531_v60, %v530_v59  ;;  %586 = vst [vmem:[#allocation3 + $0x8] sm:$0xff] %v565_v62  ;;  %v3355_v9 = vadd.f32 1.0, %v364_v63  ;;  %v2604_v10 = vor.u32 %v2788_v5, %v2603_v0  ;;  %v2416_v19 = vor.u32 %v2739_v11, %v2413_v12  ;;  %v2659_v47 = vld [vmem:[#allocation9 + $0x2c0] sm:$0xf]  ;;  %v2802_v48 = vld [vmem:[#allocation9 + $0x2c4] sm:$0xf0] }
  0x5b   : > { %588 = vst [vmem:[#allocation3 + $0x18] sm:$0xff] %v567_v1  ;;  %v365_v13 = vmul.f32 0.2, %v2229_v2  ;;  %v3357_v16 = vmul.f32 0.1, %v2229_v2  ;;  %v3360_v20 = vadd.s32 40, %v3297_v18  ;;  %v2668_v28 = vor.u32 %v2804_v26, %v2667_v25 }
  0x5c   : > { %1498 = vmatpush.bf16.msrb.mxu2 %v2352_v4  ;;  %589 = vst [vmem:[#allocation3 + $0x20] sm:$0xff] %v568_v6  ;;  %v408_v21 = vmul.f32 %v3304_v30, %v3355_v9  ;;  %v409_v22 = vmul.f32 %v3307_v31, %v3355_v9  ;;  %v410_v23 = vmul.f32 %v3310_v34, %v3355_v9  ;;  %v345_v33 = vcvt.s32.f32 %v3325_v14 }
  0x5d   : > { %v411_v24 = vmul.f32 %v3314_v50, %v3355_v9  ;;  %v3370_v27 = vadd.f32 1.0, %v365_v13  ;;  %1442 = vmatpush.bf16.msrb.mxu0 %v2604_v10  ;;  %1526 = vmatpush.bf16.msrb.mxu3 %v2416_v19  ;;  %v346_v35 = vcvt.s32.f32 %v3360_v20  ;;  %v2344_v54 = vor.u32 %v2721_v29, %v2341_v32 }
  0x5e   : > { %v450_v36 = vadd.f32 %v408_v21, %v3353_v3  ;;  %v451_v37 = vadd.f32 %v409_v22, %v3353_v3  ;;  %v452_v38 = vadd.f32 %v410_v23, %v3353_v3  ;;  %1470 = vmatpush.bf16.msrb.mxu1 %v2668_v28  ;;  %v2596_v55 = vor.u32 %v2786_v41, %v2595_v40 }
  0x5f   : > { %v453_v39 = vadd.f32 %v411_v24, %v3353_v3  ;;  %v414_v43 = vmul.f32 %v3304_v30, %v3370_v27  ;;  %v415_v44 = vmul.f32 %v3307_v31, %v3370_v27  ;;  %v416_v14 = vmul.f32 %v3310_v34, %v3370_v27 }
  0x60   : > { %v417_v45 = vmul.f32 %v3314_v50, %v3370_v27  ;;  %v2235_v49 = vld [vmem:[#allocation3] sm:$0xf]  ;;  %v2695_v51 = vld [vmem:[#allocation3 + $0x4] sm:$0xf]  ;;  %v492_v52 = vmax.f32 %v450_v36, 0.0  ;;  %v493_v53 = vmax.f32 %v451_v37, 0.0  ;;  %1499 = vmatpush.bf16.msrb.mxu2 %v2344_v54  ;;  %v2408_v4 = vor.u32 %v2737_v42, %v2405_v46 }
  0x61   : > { %v2243_v56 = vld [vmem:[#allocation3 + $0x8] sm:$0xf]  ;;  %v2696_v57 = vld [vmem:[#allocation3 + $0xc] sm:$0xf]  ;;  %v456_v58 = vadd.f32 %v414_v43, %v3357_v16  ;;  %v457_v59 = vadd.f32 %v415_v44, %v3357_v16  ;;  %v458_v60 = vadd.f32 %v416_v14, %v3357_v16  ;;  %1443 = vmatpush.bf16.msrb.mxu0 %v2596_v55  ;;  %v2660_v5 = vor.u32 %v2802_v48, %v2659_v47  ;;  %v2587_v46 = vld [vmem:[#allocation9 + $0x230] sm:$0xf] }
  0x62   : > { %v459_v62 = vadd.f32 %v417_v45, %v3357_v16  ;;  %v2698_v63 = vld [vmem:[#allocation3 + $0x14] sm:$0xf0]  ;;  %v2237_v0 = vld [vmem:[#allocation3 + $0x18] sm:$0xf0]  ;;  %v534_v1 = vmin.f32 %v492_v52, 1.0  ;;  %v535_v2 = vmin.f32 %v493_v53, 1.0  ;;  %1527 = vmatpush.bf16.msrb.mxu3 %v2408_v4 }
  0x63   : > { %v3390_v6 = vor.u32 %v2698_v63, %v2235_v49  ;;  %v3392_v10 = vor.u32 %v2695_v51, %v2237_v0  ;;  %v2699_v11 = vld [vmem:[#allocation3 + $0x1c] sm:$0xf0]  ;;  %v2245_v12 = vld [vmem:[#allocation3 + $0x20] sm:$0xf0]  ;;  %v498_v13 = vmax.f32 %v456_v58, 0.0  ;;  %v499_v19 = vmax.f32 %v457_v59, 0.0  ;;  %1471 = vmatpush.bf16.msrb.mxu1 %v2660_v5 }
  0x64   : > { %v3394_v21 = vor.u32 %v2699_v11, %v2243_v56  ;;  %v3396_v22 = vor.u32 %v2696_v57, %v2245_v12  ;;  %v570_v23 = vpack.c.bf16 %v535_v2, %v534_v1  ;;  %v494_v24 = vmax.f32 %v452_v38, 0.0  ;;  %v2719_v44 = vld [vmem:[#allocation9 + $0x34] sm:$0xf]  ;;  %v2333_v45 = vld [vmem:[#allocation9 + $0x38] sm:$0xf0] }
  0x65   : > { %1336 = vmatmul.bf16.vlgmr.msra.gmra.mxu0 %v3390_v6  ;;  %1364 = vmatmul.bf16.vlgmr.msra.gmra.mxu1 %v3392_v10  ;;  %v540_v25 = vmin.f32 %v498_v13, 1.0  ;;  %v541_v26 = vmin.f32 %v499_v19, 1.0  ;;  %v495_v28 = vmax.f32 %v453_v39, 0.0  ;;  %v500_v29 = vmax.f32 %v458_v60, 0.0  ;;  %v2784_v51 = vld [vmem:[#allocation9 + $0x234] sm:$0xf0] }
  0x66   : > { %1392 = vmatmul.bf16.vlgmr.msra.gmra.mxu2 %v3394_v21  ;;  %1420 = vmatmul.bf16.vlgmr.msra.gmra.mxu3 %v3396_v22  ;;  %591 = vst [vmem:[#allocation3 + $0x30] sm:$0xff] %v570_v23  ;;  %v501_v32 = vmax.f32 %v459_v62, 0.0  ;;  %v536_v36 = vmin.f32 %v494_v24, 1.0  ;;  %v352_v37 = vmul.f32 0.02, %v345_v33  ;;  %v3403_v38 = vadd.s32 48, %v3297_v18 }
  0x67   : > { %v573_v40 = vpack.c.bf16 %v541_v26, %v540_v25  ;;  %v537_v41 = vmin.f32 %v495_v28, 1.0  ;;  %v542_v42 = vmin.f32 %v500_v29, 1.0  ;;  %v353_v43 = vmul.f32 0.02, %v346_v35  ;;  %v2735_v33 = vld [vmem:[#allocation9 + $0xb4] sm:$0xf] }
  0x68   : > { %v543_v39 = vmin.f32 %v501_v32, 1.0  ;;  %v2230_v14 = vadd.f32 -0.5, %v352_v37  ;;  %v2336_v49 = vor.u32 %v2719_v44, %v2333_v45  ;;  %v2588_v53 = vor.u32 %v2784_v51, %v2587_v46  ;;  %v2397_v54 = vld [vmem:[#allocation9 + $0xb8] sm:$0xf0]  ;;  %v2651_v57 = vld [vmem:[#allocation9 + $0x2b0] sm:$0xf] }
  0x69   : > { %594 = vst [vmem:[#allocation3 + $0x48] sm:$0xff] %v573_v40  ;;  %v571_v47 = vpack.c.bf16 %v537_v41, %v536_v36  ;;  %v2231_v48 = vadd.f32 -0.5, %v353_v43  ;;  %v2400_v20 = vor.u32 %v2735_v33, %v2397_v54  ;;  %v2800_v58 = vld [vmem:[#allocation9 + $0x2b4] sm:$0xf0]  ;;  %v347_v63 = vcvt.s32.f32 %v3403_v38  ;;  %v2717_v24 = vld [vmem:[#allocation9 + $0x24] sm:$0xf] }
  0x6a   : > { %v574_v52 = vpack.c.bf16 %v543_v39, %v542_v42  ;;  %v366_v18 = vmul.f32 0.2, %v2230_v14  ;;  %v3407_v56 = vmul.f32 0.1, %v2230_v14  ;;  %1500 = vmatpush.bf16.msrb.mxu2 %v2336_v49  ;;  %1444 = vmatpush.bf16.msrb.mxu0 %v2588_v53  ;;  %v2652_v62 = vor.u32 %v2800_v58, %v2651_v57  ;;  %v2325_v25 = vld [vmem:[#allocation9 + $0x28] sm:$0xf0] }
  0x6b   : > { %592 = vst [vmem:[#allocation3 + $0x38] sm:$0xff] %v571_v47  ;;  %v367_v55 = vmul.f32 0.2, %v2231_v48  ;;  %v3413_v60 = vmul.f32 0.1, %v2231_v48  ;;  %1528 = vmatpush.bf16.msrb.mxu3 %v2400_v20 }
  0x6c   : > { %595 = vst [vmem:[#allocation3 + $0x50] sm:$0xff] %v574_v52  ;;  %v3409_v35 = vadd.f32 1.0, %v366_v18  ;;  %1472 = vmatpush.bf16.msrb.mxu1 %v2652_v62  ;;  %v2579_v26 = vld [vmem:[#allocation9 + $0x220] sm:$0xf]  ;;  %v2782_v41 = vld [vmem:[#allocation9 + $0x224] sm:$0xf0] }
  0x6d   : > { %v3411_v59 = vadd.f32 1.0, %v367_v55  ;;  %v2259_v0 = vld [vmem:[#allocation3 + $0x30] sm:$0xf]  ;;  %v2701_v1 = vld [vmem:[#allocation3 + $0x34] sm:$0xf]  ;;  %v2328_v55 = vor.u32 %v2717_v24, %v2325_v25  ;;  %v2580_v20 = vor.u32 %v2782_v41, %v2579_v26 }
  0x6e   : > { %v420_v2 = vmul.f32 %v3304_v30, %v3409_v35  ;;  %v421_v4 = vmul.f32 %v3307_v31, %v3409_v35  ;;  %v422_v5 = vmul.f32 %v3310_v34, %v3409_v35  ;;  %v423_v11 = vmul.f32 %v3314_v50, %v3409_v35  ;;  %v2733_v14 = vld [vmem:[#allocation9 + $0xa4] sm:$0xf]  ;;  %v2389_v45 = vld [vmem:[#allocation9 + $0xa8] sm:$0xf0]  ;;  %v2715_v25 = vld [vmem:[#allocation9 + $0x14] sm:$0xf] }
  0x6f   : > { %v426_v12 = vmul.f32 %v3304_v30, %v3411_v59  ;;  %v427_v13 = vmul.f32 %v3307_v31, %v3411_v59  ;;  %v428_v19 = vmul.f32 %v3310_v34, %v3411_v59  ;;  %v429_v23 = vmul.f32 %v3314_v50, %v3411_v59  ;;  %v2317_v26 = vld [vmem:[#allocation9 + $0x18] sm:$0xf0]  ;;  %1501 = vmatpush.bf16.msrb.mxu2 %v2328_v55  ;;  %v2571_v41 = vld [vmem:[#allocation9 + $0x210] sm:$0xf]  ;;  %v2713_v55 = vld [vmem:[#allocation9 + $0x4] sm:$0xf] }
  0x70   : > { %v2704_v28 = vld [vmem:[#allocation3 + $0x44] sm:$0xf0]  ;;  %v2261_v29 = vld [vmem:[#allocation3 + $0x48] sm:$0xf0]  ;;  %v462_v32 = vadd.f32 %v420_v2, %v3407_v56  ;;  %v463_v36 = vadd.f32 %v421_v4, %v3407_v56  ;;  %v464_v37 = vadd.f32 %v422_v5, %v3407_v56  ;;  %v465_v40 = vadd.f32 %v423_v11, %v3407_v56  ;;  %v2798_v2 = vld [vmem:[#allocation9 + $0x2a4] sm:$0xf0]  ;;  %1445 = vmatpush.bf16.msrb.mxu0 %v2580_v20 }
  0x71   : > { %v3436_v42 = vor.u32 %v2704_v28, %v2259_v0  ;;  %v3438_v43 = vor.u32 %v2701_v1, %v2261_v29  ;;  %v468_v44 = vadd.f32 %v426_v12, %v3413_v60  ;;  %v469_v39 = vadd.f32 %v427_v13, %v3413_v60  ;;  %v2643_v1 = vld [vmem:[#allocation9 + $0x2a0] sm:$0xf]  ;;  %v2309_v20 = vld [vmem:[#allocation9 + $0x8] sm:$0xf0] }
  0x72   : > { %v2267_v46 = vld [vmem:[#allocation3 + $0x38] sm:$0xf]  ;;  %v2702_v47 = vld [vmem:[#allocation3 + $0x3c] sm:$0xf]  ;;  %v504_v48 = vmax.f32 %v462_v32, 0.0  ;;  %v505_v49 = vmax.f32 %v463_v36, 0.0  ;;  %v470_v51 = vadd.f32 %v428_v19, %v3413_v60  ;;  %v471_v33 = vadd.f32 %v429_v23, %v3413_v60 }
  0x73   : > { %v2705_v52 = vld [vmem:[#allocation3 + $0x4c] sm:$0xf0]  ;;  %v2269_v18 = vld [vmem:[#allocation3 + $0x50] sm:$0xf0]  ;;  %v510_v53 = vmax.f32 %v468_v44, 0.0  ;;  %v511_v54 = vmax.f32 %v469_v39, 0.0  ;;  %v2392_v24 = vor.u32 %v2733_v14, %v2389_v45  ;;  %v2644_v36 = vor.u32 %v2798_v2, %v2643_v1 }
  0x74   : > { %v3444_v57 = vor.u32 %v2705_v52, %v2267_v46  ;;  %v3446_v58 = vor.u32 %v2702_v47, %v2269_v18  ;;  %v546_v62 = vmin.f32 %v504_v48, 1.0  ;;  %v547_v0 = vmin.f32 %v505_v49, 1.0  ;;  %v2780_v44 = vld [vmem:[#allocation9 + $0x214] sm:$0xf0]  ;;  %v2731_v47 = vld [vmem:[#allocation9 + $0x94] sm:$0xf] }
  0x75   : > { %1341 = vmatmul.bf16.gmra.mxu0 %v3436_v42  ;;  %1369 = vmatmul.bf16.gmra.mxu1 %v3438_v43  ;;  %v552_v4 = vmin.f32 %v510_v53, 1.0  ;;  %v553_v5 = vmin.f32 %v511_v54, 1.0  ;;  %v506_v11 = vmax.f32 %v464_v37, 0.0  ;;  %v507_v12 = vmax.f32 %v465_v40, 0.0  ;;  %v2381_v48 = vld [vmem:[#allocation9 + $0x98] sm:$0xf0] }
  0x76   : > { %1397 = vmatmul.bf16.gmra.mxu2 %v3444_v57  ;;  %1425 = vmatmul.bf16.gmra.mxu3 %v3446_v58  ;;  %v576_v13 = vpack.c.bf16 %v547_v0, %v546_v62  ;;  %v512_v19 = vmax.f32 %v470_v51, 0.0  ;;  %v513_v23 = vmax.f32 %v471_v33, 0.0  ;;  %v354_v39 = vmul.f32 0.02, %v347_v63  ;;  %v2635_v18 = vld [vmem:[#allocation9 + $0x290] sm:$0xf] }
  0x77   : > { %v579_v28 = vpack.c.bf16 %v553_v5, %v552_v4  ;;  %v548_v29 = vmin.f32 %v506_v11, 1.0  ;;  %v549_v32 = vmin.f32 %v507_v12, 1.0  ;;  %1529 = vmatpush.bf16.msrb.mxu3 %v2392_v24  ;;  %v2320_v46 = vor.u32 %v2715_v25, %v2317_v26  ;;  %1473 = vmatpush.bf16.msrb.mxu1 %v2644_v36  ;;  %v2796_v53 = vld [vmem:[#allocation9 + $0x294] sm:$0xf0]  ;;  %v2563_v5 = vld [vmem:[#allocation9 + $0x200] sm:$0xf] }
  0x78   : > { %597 = vst [vmem:[#allocation3 + $0x60] sm:$0xff] %v576_v13  ;;  %v554_v37 = vmin.f32 %v512_v19, 1.0  ;;  %v555_v40 = vmin.f32 %v513_v23, 1.0  ;;  %v2572_v45 = vor.u32 %v2780_v44, %v2571_v41  ;;  %v3455_v49 = vperm.slane %v3295_v17, 4  ;;  %v2778_v11 = vld [vmem:[#allocation9 + $0x204] sm:$0xf0] }
  0x79   : > { %600 = vst [vmem:[#allocation3 + $0x78] sm:$0xff] %v579_v28  ;;  %v577_v14 = vpack.c.bf16 %v549_v32, %v548_v29  ;;  %v2232_v33 = vadd.f32 -0.5, %v354_v39  ;;  %v2384_v52 = vor.u32 %v2731_v47, %v2381_v48  ;;  %v3458_v54 = vperm.slane %v3295_v17, 5  ;;  %1502 = vmatpush.bf16.msrb.mxu2 %v2320_v46  ;;  %v2729_v12 = vld [vmem:[#allocation9 + $0x84] sm:$0xf] }
  0x7a   : > { %v580_v51 = vpack.c.bf16 %v555_v40, %v554_v37  ;;  %1446 = vmatpush.bf16.msrb.mxu0 %v2572_v45  ;;  %v2636_v63 = vor.u32 %v2796_v53, %v2635_v18  ;;  %v400_v62 = vmul.f32 %v3455_v49, %v3319_v7  ;;  %v406_v0 = vmul.f32 %v3455_v49, %v3327_v15  ;;  %v2373_v25 = vld [vmem:[#allocation9 + $0x88] sm:$0xf0]  ;;  %v2627_v26 = vld [vmem:[#allocation9 + $0x280] sm:$0xf]  ;;  %v2794_v36 = vld [vmem:[#allocation9 + $0x284] sm:$0xf0] }
  0x7b   : > { %598 = vst [vmem:[#allocation3 + $0x68] sm:$0xff] %v577_v14  ;;  %v368_v1 = vmul.f32 0.2, %v2232_v33  ;;  %v3464_v2 = vmul.f32 0.1, %v2232_v33  ;;  %1530 = vmatpush.bf16.msrb.mxu3 %v2384_v52  ;;  %v2312_v4 = vor.u32 %v2713_v55, %v2309_v20  ;;  %v401_v17 = vmul.f32 %v3458_v54, %v3319_v7 }
  0x7c   : > { %601 = vst [vmem:[#allocation3 + $0x80] sm:$0xff] %v580_v51  ;;  %1474 = vmatpush.bf16.msrb.mxu1 %v2636_v63  ;;  %v407_v13 = vmul.f32 %v3458_v54, %v3327_v15  ;;  %v442_v19 = vadd.f32 %v400_v62, %v3317_v61  ;;  %v2564_v24 = vor.u32 %v2778_v11, %v2563_v5 }
  0x7d   : > { %v3471_v23 = vadd.f32 1.0, %v368_v1  ;;  %1503 = vmatpush.bf16.msrb.mxu2 %v2312_v4  ;;  %v2376_v32 = vor.u32 %v2729_v12, %v2373_v25  ;;  %v443_v7 = vadd.f32 %v401_v17, %v3317_v61  ;;  %v448_v41 = vadd.f32 %v406_v0, %v3321_v8 }
  0x7e   : > { %v449_v44 = vadd.f32 %v407_v13, %v3321_v8  ;;  %1447 = vmatpush.bf16.msrb.mxu0 %v2564_v24  ;;  %v2628_v8 = vor.u32 %v2794_v36, %v2627_v26  ;;  %v484_v47 = vmax.f32 %v442_v19, 0.0  ;;  %v412_v63 = vmul.f32 %v3455_v49, %v3355_v9  ;;  %v2791_v24 = vld [vmem:[#allocation9 + $0x274] sm:$0xf] }
  0x7f   : > { %v2283_v28 = vld [vmem:[#allocation3 + $0x60] sm:$0xf]  ;;  %v2707_v29 = vld [vmem:[#allocation3 + $0x64] sm:$0xf]  ;;  %v432_v40 = vmul.f32 %v3304_v30, %v3471_v23  ;;  %v433_v39 = vmul.f32 %v3307_v31, %v3471_v23  ;;  %v434_v46 = vmul.f32 %v3310_v34, %v3471_v23  ;;  %v435_v14 = vmul.f32 %v3314_v50, %v3471_v23  ;;  %1531 = vmatpush.bf16.msrb.mxu3 %v2376_v32 }
  0x80   : > { %v2710_v37 = vld [vmem:[#allocation3 + $0x74] sm:$0xf0]  ;;  %v2285_v15 = vld [vmem:[#allocation3 + $0x78] sm:$0xf0]  ;;  %1475 = vmatpush.bf16.msrb.mxu1 %v2628_v8  ;;  %v485_v18 = vmax.f32 %v443_v7, 0.0  ;;  %v490_v53 = vmax.f32 %v448_v41, 0.0  ;;  %v413_v32 = vmul.f32 %v3458_v54, %v3355_v9 }
  0x81   : > { %v3484_v61 = vor.u32 %v2710_v37, %v2283_v28  ;;  %v3486_v45 = vor.u32 %v2707_v29, %v2285_v15  ;;  %v474_v30 = vadd.f32 %v432_v40, %v3464_v2  ;;  %v475_v31 = vadd.f32 %v433_v39, %v3464_v2  ;;  %v2621_v29 = vld [vmem:[#allocation9 + $0x278] sm:$0xf0]  ;;  %v2807_v15 = vld [vmem:[#allocation9 + $0x2f4] sm:$0xf] }
  0x82   : > { %v2291_v48 = vld [vmem:[#allocation3 + $0x68] sm:$0xf]  ;;  %v2708_v51 = vld [vmem:[#allocation3 + $0x6c] sm:$0xf]  ;;  %v476_v33 = vadd.f32 %v434_v46, %v3464_v2  ;;  %v477_v34 = vadd.f32 %v435_v14, %v3464_v2  ;;  %v491_v17 = vmax.f32 %v449_v44, 0.0  ;;  %v526_v5 = vmin.f32 %v484_v47, 1.0 }
  0x83   : > { %v2711_v52 = vld [vmem:[#allocation3 + $0x7c] sm:$0xf0]  ;;  %v2293_v50 = vld [vmem:[#allocation3 + $0x80] sm:$0xf0]  ;;  %v516_v62 = vmax.f32 %v474_v30, 0.0  ;;  %v517_v0 = vmax.f32 %v475_v31, 0.0  ;;  %v2624_v41 = vor.u32 %v2791_v24, %v2621_v29  ;;  %v418_v40 = vmul.f32 %v3455_v49, %v3370_v27 }
  0x84   : > { %v3494_v55 = vor.u32 %v2711_v52, %v2291_v48  ;;  %v3496_v20 = vor.u32 %v2708_v51, %v2293_v50  ;;  %v518_v1 = vmax.f32 %v476_v33, 0.0  ;;  %v519_v4 = vmax.f32 %v477_v34, 0.0  ;;  %v2759_v44 = vld [vmem:[#allocation9 + $0x174] sm:$0xf]  ;;  %v2493_v37 = vld [vmem:[#allocation9 + $0x178] sm:$0xf0] }
  0x85   : > { %1346 = vmatmul.bf16.gmra.mxu0 %v3484_v61  ;;  %1374 = vmatmul.bf16.gmra.mxu1 %v3486_v45  ;;  %v558_v11 = vmin.f32 %v516_v62, 1.0  ;;  %v559_v12 = vmin.f32 %v517_v0, 1.0  ;;  %v527_v13 = vmin.f32 %v485_v18, 1.0  ;;  %v532_v19 = vmin.f32 %v490_v53, 1.0  ;;  %v2685_v8 = vld [vmem:[#allocation9 + $0x2f8] sm:$0xf0] }
  0x86   : > { %1402 = vmatmul.bf16.gmra.mxu2 %v3494_v55  ;;  %1430 = vmatmul.bf16.gmra.mxu3 %v3496_v20  ;;  %v560_v25 = vmin.f32 %v518_v1, 1.0  ;;  %v561_v26 = vmin.f32 %v519_v4, 1.0  ;;  %v533_v28 = vmin.f32 %v491_v17, 1.0  ;;  %v2496_v14 = vor.u32 %v2759_v44, %v2493_v37  ;;  %v2775_v47 = vld [vmem:[#allocation9 + $0x1f4] sm:$0xf] }
  0x87   : > { %v582_v36 = vpack.c.bf16 %v559_v12, %v558_v11  ;;  %v566_v7 = vpack.c.bf16 %v527_v13, %v526_v5  ;;  %v2557_v48 = vld [vmem:[#allocation9 + $0x1f8] sm:$0xf0]  ;;  %v419_v51 = vmul.f32 %v3458_v54, %v3370_v27  ;;  %1608 = vmatpush.bf16.msra.mxu2 %v2624_v41  ;;  %v2688_v9 = vor.u32 %v2807_v15, %v2685_v8  ;;  %v2789_v31 = vld [vmem:[#allocation9 + $0x264] sm:$0xf]  ;;  %v2613_v33 = vld [vmem:[#allocation9 + $0x268] sm:$0xf0] }
  0x88   : > { %v583_v39 = vpack.c.bf16 %v561_v26, %v560_v25  ;;  %v569_v46 = vpack.c.bf16 %v533_v28, %v532_v19  ;;  %v2560_v30 = vor.u32 %v2775_v47, %v2557_v48  ;;  %v454_v34 = vadd.f32 %v412_v63, %v3353_v3  ;;  %1552 = vmatpush.bf16.msra.mxu0 %v2496_v14  ;;  %v2757_v50 = vld [vmem:[#allocation9 + $0x164] sm:$0xf]  ;;  %v2485_v18 = vld [vmem:[#allocation9 + $0x168] sm:$0xf0]  ;;  %v2605_v48 = vld [vmem:[#allocation9 + $0x258] sm:$0xf0] }
  0x89   : > { %v2616_v52 = vor.u32 %v2789_v31, %v2613_v33  ;;  %v455_v53 = vadd.f32 %v413_v32, %v3353_v3  ;;  %v794_v62 = vunpack.c.l.b16 %v582_v36  ;;  %v795_v0 = vunpack.c.h.b16 %v582_v36  ;;  %587 = vst [vmem:[#allocation3 + $0x10] sm:$0xff] %v566_v7  ;;  %1636 = vmatpush.bf16.msra.mxu3 %v2688_v9  ;;  %v2805_v27 = vld [vmem:[#allocation9 + $0x2e4] sm:$0xf]  ;;  %v2677_v4 = vld [vmem:[#allocation9 + $0x2e8] sm:$0xf0] }
  0x8a   : > { %1580 = vmatpush.bf16.msra.mxu1 %v2560_v30  ;;  %v2488_v1 = vor.u32 %v2757_v50, %v2485_v18  ;;  %v796_v17 = vunpack.c.l.b16 %v583_v39  ;;  %v797_v5 = vunpack.c.h.b16 %v583_v39  ;;  %590 = vst [vmem:[#allocation3 + $0x28] sm:$0xff] %v569_v46  ;;  %v2680_v11 = vor.u32 %v2805_v27, %v2677_v4  ;;  %v2773_v12 = vld [vmem:[#allocation9 + $0x1e4] sm:$0xf]  ;;  %v2549_v63 = vld [vmem:[#allocation9 + $0x1e8] sm:$0xf0] }
  0x8b   : > { %v460_v13 = vadd.f32 %v418_v40, %v3357_v16  ;;  %1609 = vmatpush.bf16.msra.mxu2 %v2616_v52  ;;  %v2552_v19 = vor.u32 %v2773_v12, %v2549_v63  ;;  %v461_v3 = vadd.f32 %v419_v51, %v3357_v16  ;;  %v496_v24 = vmax.f32 %v454_v34, 0.0  ;;  %v2755_v30 = vld [vmem:[#allocation9 + $0x154] sm:$0xf]  ;;  %v2477_v31 = vld [vmem:[#allocation9 + $0x158] sm:$0xf0] }
  0x8c   : > { %v497_v25 = vmax.f32 %v455_v53, 0.0  ;;  %1553 = vmatpush.bf16.msra.mxu0 %v2488_v1  ;;  %v3512_v36 = vpack.c.b16 %v794_v62, %v794_v62  ;;  %v3514_v7 = vpack.c.b16 %v795_v0, %v795_v0  ;;  %v3516_v41 = vpack.c.b16 %v796_v17, %v796_v17  ;;  %v2803_v33 = vld [vmem:[#allocation9 + $0x2d4] sm:$0xf]  ;;  %v2541_v50 = vld [vmem:[#allocation9 + $0x1d8] sm:$0xf0] }
  0x8d   : > { %v502_v26 = vmax.f32 %v460_v13, 0.0  ;;  %1637 = vmatpush.bf16.msra.mxu3 %v2680_v11  ;;  %v503_v28 = vmax.f32 %v461_v3, 0.0  ;;  %v538_v29 = vmin.f32 %v496_v24, 1.0  ;;  %v3518_v37 = vpack.c.b16 %v797_v5, %v797_v5  ;;  %v2771_v52 = vld [vmem:[#allocation9 + $0x1d4] sm:$0xf] }
  0x8e   : > { %1581 = vmatpush.bf16.msra.mxu1 %v2552_v19  ;;  %v539_v32 = vmin.f32 %v497_v25, 1.0  ;;  %v424_v40 = vmul.f32 %v3455_v49, %v3409_v35  ;;  %v425_v39 = vmul.f32 %v3458_v54, %v3409_v35  ;;  %v430_v14 = vmul.f32 %v3455_v49, %v3411_v59  ;;  %v2787_v35 = vld [vmem:[#allocation9 + $0x254] sm:$0xf]  ;;  %v2785_v27 = vld [vmem:[#allocation9 + $0x244] sm:$0xf] }
  0x8f   : > { %v544_v44 = vmin.f32 %v502_v26, 1.0  ;;  %v545_v15 = vmin.f32 %v503_v28, 1.0  ;;  %v431_v8 = vmul.f32 %v3458_v54, %v3411_v59  ;;  %v2608_v9 = vor.u32 %v2787_v35, %v2605_v48  ;;  %v2669_v59 = vld [vmem:[#allocation9 + $0x2d8] sm:$0xf0]  ;;  %v2597_v4 = vld [vmem:[#allocation9 + $0x248] sm:$0xf0] }
  0x90   : > { %v572_v16 = vpack.c.bf16 %v539_v32, %v538_v29  ;;  %v466_v47 = vadd.f32 %v424_v40, %v3407_v56  ;;  %v2480_v34 = vor.u32 %v2755_v30, %v2477_v31  ;;  %v467_v18 = vadd.f32 %v425_v39, %v3407_v56  ;;  %v2753_v17 = vld [vmem:[#allocation9 + $0x144] sm:$0xf]  ;;  %v2469_v11 = vld [vmem:[#allocation9 + $0x148] sm:$0xf0]  ;;  %v2251_v28 = vld [vmem:[#allocation3 + $0x10] sm:$0xf] }
  0x91   : > { %v575_v46 = vpack.c.bf16 %v545_v15, %v544_v44  ;;  %v472_v53 = vadd.f32 %v430_v14, %v3413_v60  ;;  %v473_v62 = vadd.f32 %v431_v8, %v3413_v60  ;;  %1610 = vmatpush.bf16.msra.mxu2 %v2608_v9  ;;  %v2672_v0 = vor.u32 %v2803_v33, %v2669_v59  ;;  %v2801_v12 = vld [vmem:[#allocation9 + $0x2c4] sm:$0xf]  ;;  %v2661_v63 = vld [vmem:[#allocation9 + $0x2c8] sm:$0xf0]  ;;  %v2697_v29 = vld [vmem:[#allocation3 + $0x14] sm:$0xf] }
  0x92   : > { %593 = vst [vmem:[#allocation3 + $0x40] sm:$0xff] %v572_v16  ;;  %v508_v51 = vmax.f32 %v466_v47, 0.0  ;;  %v2544_v1 = vor.u32 %v2771_v52, %v2541_v50  ;;  %1554 = vmatpush.bf16.msra.mxu0 %v2480_v34  ;;  %v2600_v5 = vor.u32 %v2785_v27, %v2597_v4  ;;  %v2472_v13 = vor.u32 %v2753_v17, %v2469_v11  ;;  %v2769_v56 = vld [vmem:[#allocation9 + $0x1c4] sm:$0xf]  ;;  %v2533_v3 = vld [vmem:[#allocation9 + $0x1c8] sm:$0xf0] }
  0x93   : > { %596 = vst [vmem:[#allocation3 + $0x58] sm:$0xff] %v575_v46  ;;  %1638 = vmatpush.bf16.msra.mxu3 %v2672_v0  ;;  %v2664_v19 = vor.u32 %v2801_v12, %v2661_v63  ;;  %v509_v24 = vmax.f32 %v467_v18, 0.0  ;;  %v514_v25 = vmax.f32 %v472_v53, 0.0  ;;  %v515_v60 = vmax.f32 %v473_v62, 0.0  ;;  %v2700_v44 = vld [vmem:[#allocation3 + $0x24] sm:$0xf0] }
  0x94   : > { %1582 = vmatpush.bf16.msra.mxu1 %v2544_v1  ;;  %v550_v26 = vmin.f32 %v508_v51, 1.0  ;;  %v2536_v32 = vor.u32 %v2769_v56, %v2533_v3  ;;  %v2253_v15 = vld [vmem:[#allocation3 + $0x28] sm:$0xf0]  ;;  %v3536_v14 = vor.u32 %v2700_v44, %v2251_v28  ;;  %v2783_v35 = vld [vmem:[#allocation9 + $0x234] sm:$0xf]  ;;  %v436_v9 = vmul.f32 %v3455_v49, %v3471_v23 }
  0x95   : > { %1351 = vmatmul.bf16.gmra.mxu0 %v3512_v36  ;;  %1379 = vmatmul.bf16.gmra.mxu1 %v3514_v7  ;;  %v551_v16 = vmin.f32 %v509_v24, 1.0  ;;  %v556_v40 = vmin.f32 %v514_v25, 1.0  ;;  %v557_v39 = vmin.f32 %v515_v60, 1.0  ;;  %v3538_v8 = vor.u32 %v2697_v29, %v2253_v15  ;;  %v2589_v48 = vld [vmem:[#allocation9 + $0x238] sm:$0xf0] }
  0x96   : > { %1407 = vmatmul.bf16.gmra.mxu2 %v3516_v41  ;;  %1435 = vmatmul.bf16.gmra.mxu3 %v3518_v37  ;;  %v2751_v51 = vld [vmem:[#allocation9 + $0x134] sm:$0xf]  ;;  %v437_v30 = vmul.f32 %v3458_v54, %v3471_v23  ;;  %v2592_v31 = vor.u32 %v2783_v35, %v2589_v48  ;;  %v2461_v33 = vld [vmem:[#allocation9 + $0x138] sm:$0xf0]  ;;  %v2581_v1 = vld [vmem:[#allocation9 + $0x228] sm:$0xf0] }
  0x97   : > { %1611 = vmatpush.bf16.msra.mxu2 %v2600_v5  ;;  %1555 = vmatpush.bf16.msra.mxu0 %v2472_v13  ;;  %v578_v46 = vpack.c.bf16 %v551_v16, %v550_v26  ;;  %v581_v47 = vpack.c.bf16 %v557_v39, %v556_v40  ;;  %v2799_v34 = vld [vmem:[#allocation9 + $0x2b4] sm:$0xf]  ;;  %v2653_v59 = vld [vmem:[#allocation9 + $0x2b8] sm:$0xf0]  ;;  %v2464_v52 = vor.u32 %v2751_v51, %v2461_v33  ;;  %v2749_v54 = vld [vmem:[#allocation9 + $0x124] sm:$0xf] }
  0x98   : > { %1639 = vmatpush.bf16.msra.mxu3 %v2664_v19  ;;  %1583 = vmatpush.bf16.msra.mxu1 %v2536_v32  ;;  %v2656_v50 = vor.u32 %v2799_v34, %v2653_v59  ;;  %v2767_v18 = vld [vmem:[#allocation9 + $0x1b4] sm:$0xf]  ;;  %v2525_v53 = vld [vmem:[#allocation9 + $0x1b8] sm:$0xf0]  ;;  %v479_v62 = vadd.f32 %v437_v30, %v3464_v2  ;;  %v2453_v23 = vld [vmem:[#allocation9 + $0x128] sm:$0xf0] }
  0x99   : > { %599 = vst [vmem:[#allocation3 + $0x70] sm:$0xff] %v578_v46  ;;  %v2528_v0 = vor.u32 %v2767_v18, %v2525_v53  ;;  %v2797_v27 = vld [vmem:[#allocation9 + $0x2a4] sm:$0xf]  ;;  %v2645_v4 = vld [vmem:[#allocation9 + $0x2a8] sm:$0xf0]  ;;  %v2456_v17 = vor.u32 %v2749_v54, %v2453_v23 }
  0x9a   : > { %602 = vst [vmem:[#allocation3 + $0x88] sm:$0xff] %v581_v47  ;;  %v2648_v5 = vor.u32 %v2797_v27, %v2645_v4  ;;  %v2765_v11 = vld [vmem:[#allocation9 + $0x1a4] sm:$0xf]  ;;  %v2517_v12 = vld [vmem:[#allocation9 + $0x1a8] sm:$0xf0]  ;;  %v521_v13 = vmax.f32 %v479_v62, 0.0 }
  0x9b   : > { %1612 = vmatpush.bf16.msra.mxu2 %v2592_v31  ;;  %1556 = vmatpush.bf16.msra.mxu0 %v2464_v52  ;;  %v2275_v19 = vld [vmem:[#allocation3 + $0x40] sm:$0xf]  ;;  %v2703_v56 = vld [vmem:[#allocation3 + $0x44] sm:$0xf]  ;;  %v2706_v3 = vld [vmem:[#allocation3 + $0x54] sm:$0xf0] }
  0x9c   : > { %1640 = vmatpush.bf16.msra.mxu3 %v2656_v50  ;;  %1584 = vmatpush.bf16.msra.mxu1 %v2528_v0  ;;  %v2277_v24 = vld [vmem:[#allocation3 + $0x58] sm:$0xf0]  ;;  %v563_v60 = vmin.f32 %v521_v13, 1.0  ;;  %v3550_v28 = vor.u32 %v2706_v3, %v2275_v19  ;;  %v2779_v32 = vld [vmem:[#allocation9 + $0x214] sm:$0xf] }
  0x9d   : > { %v3552_v29 = vor.u32 %v2703_v56, %v2277_v24  ;;  %v2573_v44 = vld [vmem:[#allocation9 + $0x218] sm:$0xf0]  ;;  %v2747_v15 = vld [vmem:[#allocation9 + $0x114] sm:$0xf]  ;;  %v2565_v31 = vld [vmem:[#allocation9 + $0x208] sm:$0xf0] }
  0x9e   : > { %v2576_v16 = vor.u32 %v2779_v32, %v2573_v44  ;;  %v2445_v40 = vld [vmem:[#allocation9 + $0x118] sm:$0xf0]  ;;  %v2795_v39 = vld [vmem:[#allocation9 + $0x294] sm:$0xf]  ;;  %v2745_v33 = vld [vmem:[#allocation9 + $0x104] sm:$0xf] }
  0x9f   : > { %1557 = vmatpush.bf16.msra.mxu0 %v2456_v17  ;;  %v2637_v46 = vld [vmem:[#allocation9 + $0x298] sm:$0xf0]  ;;  %v2448_v47 = vor.u32 %v2747_v15, %v2445_v40  ;;  %v2763_v48 = vld [vmem:[#allocation9 + $0x194] sm:$0xf]  ;;  %v2437_v34 = vld [vmem:[#allocation9 + $0x108] sm:$0xf0] }
  0xa0   : > { %1641 = vmatpush.bf16.msra.mxu3 %v2648_v5  ;;  %v2640_v35 = vor.u32 %v2795_v39, %v2637_v46  ;;  %v2509_v51 = vld [vmem:[#allocation9 + $0x198] sm:$0xf0]  ;;  %v2793_v59 = vld [vmem:[#allocation9 + $0x284] sm:$0xf]  ;;  %v2629_v52 = vld [vmem:[#allocation9 + $0x288] sm:$0xf0] }
  0xa1   : > { %v2512_v30 = vor.u32 %v2763_v48, %v2509_v51  ;;  %v2761_v50 = vld [vmem:[#allocation9 + $0x184] sm:$0xf]  ;;  %v2632_v18 = vor.u32 %v2793_v59, %v2629_v52  ;;  %v2501_v53 = vld [vmem:[#allocation9 + $0x188] sm:$0xf0]  ;;  %v2712_v62 = vld [vmem:[#allocation3 + $0x84] sm:$0xf0] }
  0xa2   : > { %v2709_v0 = vld [vmem:[#allocation3 + $0x74] sm:$0xf] }
  0xa3   : > { %1558 = vmatpush.bf16.msra.mxu0 %v2448_v47  ;;  %v3600_v46 = vld [vmem:[#allocation11] sm:$0x3] }
  0xa4   : > { %1642 = vmatpush.bf16.msra.mxu3 %v2640_v35 }
  0xa5   : > { %1448 = vmatmul.bf16.vlgmr.msrb.gmra.mxu0 %v3536_v14  ;;  %1476 = vmatmul.bf16.vlgmr.msrb.gmra.mxu1 %v3538_v8 }
  0xa6   : > { %1504 = vmatmul.bf16.vlgmr.msrb.gmra.mxu2 %v3390_v6  ;;  %1532 = vmatmul.bf16.vlgmr.msrb.gmra.mxu3 %v3392_v10  ;;  %v2781_v6 = vld [vmem:[#allocation9 + $0x224] sm:$0xf]  ;;  %v478_v10 = vadd.f32 %v436_v9, %v3464_v2  ;;  %v2520_v2 = vor.u32 %v2765_v11, %v2517_v12 }
  0xa7   : > { %v2584_v49 = vor.u32 %v2781_v6, %v2581_v1  ;;  %v2777_v9 = vld [vmem:[#allocation9 + $0x204] sm:$0xf]  ;;  %v2504_v6 = vor.u32 %v2761_v50, %v2501_v53  ;;  %v2301_v1 = vld [vmem:[#allocation3 + $0x88] sm:$0xf0] }
  0xa8   : > { %v520_v63 = vmax.f32 %v478_v10, 0.0  ;;  %1585 = vmatpush.bf16.msra.mxu1 %v2520_v2  ;;  %v2299_v10 = vld [vmem:[#allocation3 + $0x70] sm:$0xf]  ;;  %1643 = vmatpush.bf16.msra.mxu3 %v2632_v18  ;;  %v2304_v54 = vor.u32 %v2709_v0, %v2301_v1 }
  0xa9   : > { %1613 = vmatpush.bf16.msra.mxu2 %v2584_v49  ;;  %v2300_v49 = vor.u32 %v2712_v62, %v2299_v10 }
  0xaa   : > { %v562_v25 = vmin.f32 %v520_v63, 1.0 }
  0xac   : > { %v584_v26 = vpack.c.bf16 %v563_v60, %v562_v25  ;;  %1586 = vmatpush.bf16.msra.mxu1 %v2512_v30 }
  0xad   : > { %1614 = vmatpush.bf16.msra.mxu2 %v2576_v16 }
  0xae   : > { %v798_v23 = vunpack.c.l.b16 %v584_v26  ;;  %v799_v27 = vunpack.c.h.b16 %v584_v26 }
  0xb0   : > { %1587 = vmatpush.bf16.msra.mxu1 %v2504_v6  ;;  %v822_v4 = vpack.c.b16 %v798_v23, %v798_v23  ;;  %v823_v17 = vpack.c.b16 %v799_v27, %v799_v27 }
  0xb5   : > { %1453 = vmatmul.bf16.gmra.mxu0 %v3550_v28  ;;  %1481 = vmatmul.bf16.gmra.mxu1 %v3552_v29 }
  0xb6   : > { %1509 = vmatmul.bf16.gmra.mxu2 %v3436_v42  ;;  %1537 = vmatmul.bf16.gmra.mxu3 %v3438_v43  ;;  %v2568_v42 = vor.u32 %v2777_v9, %v2565_v31  ;;  %v2440_v43 = vor.u32 %v2745_v33, %v2437_v34  ;;  %v3608_v34 = vld [vmem:[%s4039_s3] ss:$0 sm:$0xff] }
  0xb8   : > { %1615 = vmatpush.bf16.msra.mxu2 %v2568_v42  ;;  %1559 = vmatpush.bf16.msra.mxu0 %v2440_v43 }
  0xc5   : > { %1458 = vmatmul.bf16.gmra.mxu0 %v2300_v49  ;;  %1486 = vmatmul.bf16.gmra.mxu1 %v2304_v54 }
  0xc6   : > { %1514 = vmatmul.bf16.gmra.mxu2 %v3484_v61  ;;  %1542 = vmatmul.bf16.gmra.mxu3 %v3486_v45 }
  0xd5   : > { %1463 = vmatmul.bf16.gmra.mxu0 %v822_v4  ;;  %1491 = vmatmul.bf16.gmra.mxu1 %v823_v17 }
  0xd6   : > { %1519 = vmatmul.bf16.gmra.mxu2 %v3512_v36  ;;  %1547 = vmatmul.bf16.gmra.mxu3 %v3514_v7 }
  0xe2   : > { %v1337_v5 = vpop.f32.mrf.mxu0  ;;  %v1365_v11 = vpop.f32.mrf.mxu1 }
  0xe3   : > { %v1366_v40 = vadd.f32 %v1365_v11, %v1337_v5 }
  0xe5   : > { %1560 = vmatmul.bf16.vlgmr.msra.gmra.mxu0 %v3394_v21  ;;  %1588 = vmatmul.bf16.vlgmr.msra.gmra.mxu1 %v3396_v22 }
  0xe6   : > { %1616 = vmatmul.bf16.vlgmr.msra.gmra.mxu2 %v3536_v14  ;;  %1644 = vmatmul.bf16.vlgmr.msra.gmra.mxu3 %v3538_v8 }
  0xe9   : > { %v1393_v61 = vpop.f32.mrf.mxu2  ;;  %v1421_v45 = vpop.f32.mrf.mxu3 }
  0xea   : > { %v1339_v12 = vpop.f32.mrf.mxu0  ;;  %v1367_v63 = vpop.f32.mrf.mxu1  ;;  %v1394_v39 = vadd.f32 %v1393_v61, %v1366_v40 }
  0xec   : > { %v1422_v47 = vadd.f32 %v1421_v45, %v1394_v39 }
  0xf1   : > { %v1395_v13 = vpop.f32.mrf.mxu2  ;;  %v1423_v19 = vpop.f32.mrf.mxu3 }
  0xf2   : > { %v1342_v56 = vpop.f32.mrf.mxu0  ;;  %v1370_v36 = vpop.f32.mrf.mxu1 }
  0xf3   : > { %v1371_v10 = vadd.f32 %v1370_v36, %v1342_v56 }
  0xf5   : > { %1565 = vmatmul.bf16.gmra.mxu0 %v3444_v57  ;;  %1593 = vmatmul.bf16.gmra.mxu1 %v3446_v58 }
  0xf6   : > { %1621 = vmatmul.bf16.gmra.mxu2 %v3550_v28  ;;  %1649 = vmatmul.bf16.gmra.mxu3 %v3552_v29 }
  0xf9   : > { %v1398_v21 = vpop.f32.mrf.mxu2  ;;  %v1426_v22 = vpop.f32.mrf.mxu3 }
  0xfa   : > { %v1344_v7 = vpop.f32.mrf.mxu0  ;;  %v1372_v14 = vpop.f32.mrf.mxu1  ;;  %v1399_v0 = vadd.f32 %v1398_v21, %v1371_v10 }
  0xfb   : > { %v1373_v8 = vadd.f32 %v1372_v14, %v1344_v7 }
 0x101   : > { %v1400_v2 = vpop.f32.mrf.mxu2  ;;  %v3570_v3 = vpop.f32.mrf.mxu3 }
 0x102   : > { %v3572_v24 = vpop.f32.mrf.mxu0  ;;  %v3574_v25 = vpop.f32.mrf.mxu1  ;;  %v1401_v61 = vadd.f32 %v1400_v2, %v1373_v8 }
 0x103   : > { %v1376_v7 = vadd.f32 %v3574_v25, %v3572_v24 }
 0x105   : > { %1570 = vmatmul.bf16.gmra.mxu0 %v3494_v55  ;;  %1598 = vmatmul.bf16.gmra.mxu1 %v3496_v20 }
 0x106   : > { %1626 = vmatmul.bf16.gmra.mxu2 %v2300_v49  ;;  %1654 = vmatmul.bf16.gmra.mxu3 %v2304_v54  ;;  %v1427_v54 = vadd.f32 %v1426_v22, %v1399_v0 }
 0x109   : > { %v3578_v57 = vpop.f32.mrf.mxu2  ;;  %v3580_v58 = vpop.f32.mrf.mxu3 }
 0x10a   : > { %v3582_v60 = vpop.f32.mrf.mxu0  ;;  %v3584_v26 = vpop.f32.mrf.mxu1  ;;  %v1404_v8 = vadd.f32 %v3578_v57, %v1376_v7 }
 0x111   : > { %v3586_v28 = vpop.f32.mrf.mxu2  ;;  %v3588_v29 = vpop.f32.mrf.mxu3 }
 0x112   : > { %v3590_v32 = vpop.f32.mrf.mxu0  ;;  %v3592_v44 = vpop.f32.mrf.mxu1 }
 0x115   : > { %1575 = vmatmul.bf16.gmra.mxu0 %v3516_v41  ;;  %1603 = vmatmul.bf16.gmra.mxu1 %v3518_v37  ;;  %v1368_v41 = vadd.f32 %v1367_v63, %v1339_v12  ;;  %v3603_v37 = vperm.slane %v3600_v46, 0  ;;  %v1429_v63 = vadd.f32 %v3570_v3, %v1401_v61 }
 0x116   : > { %1631 = vmatmul.bf16.gmra.mxu2 %v822_v4  ;;  %1659 = vmatmul.bf16.gmra.mxu3 %v823_v17 }
 0x117   : > { %v1396_v31 = vadd.f32 %v1395_v13, %v1368_v41 }
 0x119   : > { %v3596_v55 = vpop.f32.mrf.mxu2  ;;  %v3598_v20 = vpop.f32.mrf.mxu3  ;;  %v1424_v43 = vadd.f32 %v1423_v19, %v1396_v31 }
 0x11a   : > { %v1354_v15 = vpop.f32.mrf.mxu0  ;;  %v1382_v16 = vpop.f32.mrf.mxu1 }
 0x11b   : > { %v1432_v15 = vadd.f32 %v3580_v58, %v1404_v8 }
 0x121   : > { %v1410_v35 = vpop.f32.mrf.mxu2  ;;  %v1438_v48 = vpop.f32.mrf.mxu3 }
 0x122   : > { %v1449_v51 = vpop.f32.mrf.mxu0  ;;  %v1477_v9 = vpop.f32.mrf.mxu1  ;;  %v1378_v35 = vadd.f32 %v3584_v26, %v3582_v60  ;;  %v1381_v26 = vadd.f32 %v3592_v44, %v3590_v32 }
 0x123   : > { %v1450_v30 = vadd.f32 %v1449_v51, %v1422_v47 }
 0x124   : > { %v1406_v48 = vadd.f32 %v3586_v28, %v1378_v35 }
 0x125   : > { %v1478_v33 = vadd.f32 %v1477_v9, %v1450_v30 }
 0x126   : > { %v1434_v9 = vadd.f32 %v3588_v29, %v1406_v48 }
 0x127   : > { %v1715_v42 = vsub.f32 %v1478_v33, %v3603_v37 }
 0x129   : > { %v3611_v59 = vpop.f32.mrf.mxu2  ;;  %v3613_v52 = vpop.f32.mrf.mxu3  ;;  %v1831_v50 = vmul.f32 %v3608_v34, %v1715_v42  ;;  %v1729_v18 = vmul.f32 %v1715_v42, %v1715_v42 }
 0x12a   : > { %v1451_v53 = vpop.f32.mrf.mxu0  ;;  %v1479_v6 = vpop.f32.mrf.mxu1 }
 0x12b   : > { %v1452_v62 = vadd.f32 %v1451_v53, %v1424_v43  ;;  %1838 = vadd.xlane.f32.xlu2 %v1831_v50  ;;  %1736 = vadd.xlane.f32.xlu0 %v1729_v18  ;;  %v1409_v50 = vadd.f32 %v3596_v55, %v1381_v26 }
 0x12d   : > { %v1480_v1 = vadd.f32 %v1479_v6, %v1452_v62  ;;  %v1437_v53 = vadd.f32 %v3598_v20, %v1409_v50 }
 0x12f   : > { %v1717_v49 = vsub.f32 %v1480_v1, %v3603_v37 }
 0x131   : > { %v3617_v23 = vpop.f32.mrf.mxu2  ;;  %v3619_v27 = vpop.f32.mrf.mxu3  ;;  %v1730_v4 = vmul.f32 %v1717_v49, %v1717_v49  ;;  %v1832_v36 = vmul.f32 %v3608_v34, %v1717_v49 }
 0x132   : > { %v1454_v17 = vpop.f32.mrf.mxu0  ;;  %v1482_v5 = vpop.f32.mrf.mxu1  ;;  %v1536_v7 = vadd.f32 %v3619_v27, %v3617_v23 }
 0x133   : > { %v1455_v11 = vadd.f32 %v1454_v17, %v1427_v54  ;;  %1738 = vadd.xlane.f32.xlu0 %v1730_v4 }
 0x135   : > { %v1483_v45 = vadd.f32 %v1482_v5, %v1455_v11 }
 0x137   : > { %v1719_v12 = vsub.f32 %v1483_v45, %v3603_v37 }
 0x139   : > { %v3623_v13 = vpop.f32.mrf.mxu2  ;;  %v3625_v19 = vpop.f32.mrf.mxu3  ;;  %v1731_v56 = vmul.f32 %v1719_v12, %v1719_v12  ;;  %v1833_v39 = vmul.f32 %v3608_v34, %v1719_v12  ;;  %v1534_v12 = vadd.f32 %v3613_v52, %v3611_v59 }
 0x13a   : > { %v1456_v21 = vpop.f32.mrf.mxu0  ;;  %v1484_v22 = vpop.f32.mrf.mxu1  ;;  %v1539_v35 = vadd.f32 %v3625_v19, %v3623_v13 }
 0x13b   : > { %v1457_v14 = vadd.f32 %v1456_v21, %v1429_v63  ;;  %1740 = vadd.xlane.f32.xlu2 %v1731_v56  ;;  %1840 = vadd.xlane.f32.xlu0 %v1832_v36 }
 0x13d   : > { %v1485_v2 = vadd.f32 %v1484_v22, %v1457_v14 }
 0x13f   : > { %v1721_v3 = vsub.f32 %v1485_v2, %v3603_v37 }
 0x141   : > { %v3633_v16 = vpop.f32.mrf.mxu2  ;;  %v3635_v40 = vpop.f32.mrf.mxu3  ;;  %v3639_v47 = vmul.f32 %v3608_v34, %v1721_v3  ;;  %v1732_v33 = vmul.f32 %v1721_v3, %v1721_v3 }
 0x142   : > { %v1459_v24 = vpop.f32.mrf.mxu0  ;;  %v1487_v25 = vpop.f32.mrf.mxu1  ;;  %v1541_v19 = vadd.f32 %v3635_v40, %v3633_v16 }
 0x143   : > { %v1460_v57 = vadd.f32 %v1459_v24, %v1432_v15  ;;  %1842 = vadd.xlane.f32.xlu0 %v1833_v39 }
 0x145   : > { %v1488_v51 = vadd.f32 %v1487_v25, %v1460_v57 }
 0x147   : > { %v1723_v58 = vsub.f32 %v1488_v51, %v3603_v37  ;;  %v3686_v51 = vld [vmem:[%s4039_s3 + $0x1] ss:$0 sm:$0xff] }
 0x149   : > { %v3646_v41 = vpop.f32.mrf.mxu2  ;;  %v3648_v30 = vpop.f32.mrf.mxu3  ;;  %v1733_v31 = vmul.f32 %v1723_v58, %v1723_v58  ;;  %v3651_v42 = vmul.f32 %v3608_v34, %v1723_v58 }
 0x14a   : > { %v1461_v43 = vpop.f32.mrf.mxu0  ;;  %v1489_v60 = vpop.f32.mrf.mxu1 }
 0x14b   : > { %v1462_v28 = vadd.f32 %v1461_v43, %v1434_v9  ;;  %1744 = vadd.xlane.f32.xlu2 %v1733_v31  ;;  %1742 = vadd.xlane.f32.xlu0 %v1732_v33 }
 0x14d   : > { %v1490_v29 = vadd.f32 %v1489_v60, %v1462_v28 }
 0x14f   : > { %v1725_v18 = vsub.f32 %v1490_v29, %v3603_v37 }
 0x151   : > { %v3658_v6 = vpop.f32.mrf.mxu2  ;;  %v3660_v10 = vpop.f32.mrf.mxu3  ;;  %v1734_v62 = vmul.f32 %v1725_v18, %v1725_v18  ;;  %v3663_v0 = vmul.f32 %v3608_v34, %v1725_v18 }
 0x152   : > { %v1464_v1 = vpop.f32.mrf.mxu0  ;;  %v1492_v32 = vpop.f32.mrf.mxu1 }
 0x153   : > { %v1465_v44 = vadd.f32 %v1464_v1, %v1437_v53  ;;  %1746 = vadd.xlane.f32.xlu1 %v1734_v62 }
 0x155   : > { %v1493_v49 = vadd.f32 %v1492_v32, %v1465_v44 }
 0x157   : > { %v1727_v55 = vsub.f32 %v1493_v49, %v3603_v37  ;;  %v1544_v49 = vadd.f32 %v3648_v30, %v3646_v41 }
 0x159   : > { %v3666_v54 = vpop.f32.mrf.mxu2  ;;  %v3668_v4 = vpop.f32.mrf.mxu3  ;;  %v1735_v20 = vmul.f32 %v1727_v55, %v1727_v55  ;;  %v3671_v17 = vmul.f32 %v3608_v34, %v1727_v55  ;;  %v3678_v34 = vperm.slane %v3600_v46, 1 }
 0x15a   : > { %v1466_v5 = vpop.f32.mrf.mxu0  ;;  %v1494_v11 = vpop.f32.mrf.mxu1 }
 0x15b   : > { %1748 = vadd.xlane.f32.xlu0 %v1735_v20 }
 0x161   : > { %v1522_v61 = vpop.f32.mrf.mxu2  ;;  %v1550_v45 = vpop.f32.mrf.mxu3 }
 0x162   : > { %v1561_v63 = vpop.f32.mrf.mxu0  ;;  %v1589_v56 = vpop.f32.mrf.mxu1 }
 0x163   : > { %v1562_v36 = vadd.f32 %v1561_v63, %v1534_v12 }
 0x165   : > { %v1590_v37 = vadd.f32 %v1589_v56, %v1562_v36  ;;  %v1546_v56 = vadd.f32 %v3660_v10, %v3658_v6 }
 0x169   : > { %v1617_v21 = vpop.f32.mrf.mxu2  ;;  %v1645_v22 = vpop.f32.mrf.mxu3 }
 0x16a   : > { %v1618_v14 = vadd.f32 %v1617_v21, %v1590_v37  ;;  %v1563_v8 = vpop.f32.mrf.mxu0  ;;  %v1591_v2 = vpop.f32.mrf.mxu1 }
 0x16b   : > { %v1564_v15 = vadd.f32 %v1563_v8, %v1536_v7 }
 0x16c   : > { %v1646_v3 = vadd.f32 %v1645_v22, %v1618_v14 }
 0x16d   : > { %v1592_v59 = vadd.f32 %v1591_v2, %v1564_v15 }
 0x16e   : > { %v1716_v39 = vsub.f32 %v1646_v3, %v3678_v34  ;;  %v1549_v3 = vadd.f32 %v3668_v4, %v3666_v54 }
 0x170   : > { %v1889_v52 = vmul.f32 %v1716_v39, %v1716_v39  ;;  %v1992_v31 = vmul.f32 %v3686_v51, %v1716_v39 }
 0x171   : > { %v1619_v24 = vpop.f32.mrf.mxu2  ;;  %v1647_v25 = vpop.f32.mrf.mxu3 }
 0x172   : > { %v1620_v57 = vadd.f32 %v1619_v24, %v1592_v59  ;;  %1896 = vadd.xlane.f32.xlu1 %v1889_v52  ;;  %v1566_v23 = vpop.f32.mrf.mxu0  ;;  %v1594_v27 = vpop.f32.mrf.mxu1 }
 0x173   : > { %v1567_v46 = vadd.f32 %v1566_v23, %v1539_v35 }
 0x174   : > { %v1648_v48 = vadd.f32 %v1647_v25, %v1620_v57 }
 0x175   : > { %v1595_v9 = vadd.f32 %v1594_v27, %v1567_v46 }
 0x176   : > { %v1718_v58 = vsub.f32 %v1648_v48, %v3678_v34 }
 0x178   : > { %v1993_v33 = vmul.f32 %v3686_v51, %v1718_v58  ;;  %v1890_v62 = vmul.f32 %v1718_v58, %v1718_v58 }
 0x179   : > { %v1622_v43 = vpop.f32.mrf.mxu2  ;;  %v1650_v13 = vpop.f32.mrf.mxu3 }
 0x17a   : > { %v1623_v60 = vadd.f32 %v1622_v43, %v1595_v9  ;;  %1999 = vadd.xlane.f32.xlu1 %v1992_v31  ;;  %2001 = vadd.xlane.f32.xlu2 %v1993_v33  ;;  %v1568_v26 = vpop.f32.mrf.mxu0  ;;  %v1596_v28 = vpop.f32.mrf.mxu1 }
 0x17b   : > { %v1569_v29 = vadd.f32 %v1568_v26, %v1541_v19 }
 0x17c   : > { %v1651_v50 = vadd.f32 %v1650_v13, %v1623_v60 }
 0x17d   : > { %v1597_v53 = vadd.f32 %v1596_v28, %v1569_v29 }
 0x17e   : > { %v1720_v18 = vsub.f32 %v1651_v50, %v3678_v34 }
 0x180   : > { %v1891_v1 = vmul.f32 %v1720_v18, %v1720_v18  ;;  %v1994_v33 = vmul.f32 %v3686_v51, %v1720_v18 }
 0x181   : > { %v1624_v32 = vpop.f32.mrf.mxu2  ;;  %v1652_v44 = vpop.f32.mrf.mxu3 }
 0x182   : > { %v1625_v55 = vadd.f32 %v1624_v32, %v1597_v53  ;;  %1898 = vadd.xlane.f32.xlu1 %v1890_v62  ;;  %1900 = vadd.xlane.f32.xlu2 %v1891_v1  ;;  %v1571_v16 = vpop.f32.mrf.mxu0  ;;  %v1599_v40 = vpop.f32.mrf.mxu1 }
 0x183   : > { %v1572_v5 = vadd.f32 %v1571_v16, %v1544_v49 }
 0x184   : > { %v1653_v20 = vadd.f32 %v1652_v44, %v1625_v55 }
 0x185   : > { %v1600_v61 = vadd.f32 %v1599_v40, %v1572_v5 }
 0x186   : > { %v1722_v11 = vsub.f32 %v1653_v20, %v3678_v34 }
 0x188   : > { %v1892_v45 = vmul.f32 %v1722_v11, %v1722_v11  ;;  %v1995_v35 = vmul.f32 %v3686_v51, %v1722_v11 }
 0x189   : > { %v1627_v12 = vpop.f32.mrf.mxu2  ;;  %v1655_v63 = vpop.f32.mrf.mxu3 }
 0x18a   : > { %v1628_v36 = vadd.f32 %v1627_v12, %v1600_v61  ;;  %1902 = vadd.xlane.f32.xlu1 %v1892_v45  ;;  %v1573_v37 = vpop.f32.mrf.mxu0  ;;  %v1601_v41 = vpop.f32.mrf.mxu1 }
 0x18b   : > { %v1574_v21 = vadd.f32 %v1573_v37, %v1546_v56 }
 0x18c   : > { %v1656_v30 = vadd.f32 %v1655_v63, %v1628_v36 }
 0x18d   : > { %v1602_v7 = vadd.f32 %v1601_v41, %v1574_v21 }
 0x18e   : > { %v1724_v22 = vsub.f32 %v1656_v30, %v3678_v34 }
 0x190   : > { %v1893_v14 = vmul.f32 %v1724_v22, %v1724_v22  ;;  %v1996_v43 = vmul.f32 %v3686_v51, %v1724_v22 }
 0x191   : > { %v1629_v8 = vpop.f32.mrf.mxu2  ;;  %v1657_v2 = vpop.f32.mrf.mxu3 }
 0x192   : > { %v1630_v15 = vadd.f32 %v1629_v8, %v1602_v7  ;;  %1904 = vadd.xlane.f32.xlu0 %v1893_v14  ;;  %v1576_v39 = vpop.f32.mrf.mxu0  ;;  %v1604_v59 = vpop.f32.mrf.mxu1 }
 0x193   : > { %v1577_v10 = vadd.f32 %v1576_v39, %v1549_v3 }
 0x194   : > { %v1658_v6 = vadd.f32 %v1657_v2, %v1630_v15 }
 0x195   : > { %v1605_v24 = vadd.f32 %v1604_v59, %v1577_v10 }
 0x196   : > { %v1726_v52 = vsub.f32 %v1658_v6, %v3678_v34 }
 0x198   : > { %v1894_v25 = vmul.f32 %v1726_v52, %v1726_v52 }
 0x199   : > { %v1632_v57 = vpop.f32.mrf.mxu2  ;;  %v1660_v23 = vpop.f32.mrf.mxu3 }
 0x19a   : > { %v1633_v27 = vadd.f32 %v1632_v57, %v1605_v24  ;;  %1906 = vadd.xlane.f32.xlu2 %v1894_v25  ;;  %2005 = vadd.xlane.f32.xlu0 %v1995_v35  ;;  %v1578_v48 = vpop.f32.mrf.mxu0  ;;  %v1606_v46 = vpop.f32.mrf.mxu1 }
 0x19c   : > { %v1661_v54 = vadd.f32 %v1660_v23, %v1633_v27 }
 0x19e   : > { %v1728_v4 = vsub.f32 %v1661_v54, %v3678_v34  ;;  %v1997_v34 = vmul.f32 %v3686_v51, %v1726_v52  ;;  %v1737_v19 = vpop.xlane.xlu0 %1736 }
 0x19f   : > { %v1750_v18 = vadd.f32 1e-12, %v1737_v19 }
 0x1a0   : > { %v1895_v58 = vmul.f32 %v1728_v4, %v1728_v4  ;;  %v1998_v13 = vmul.f32 %v3686_v51, %v1728_v4 }
 0x1a1   : > { %v1634_v9 = vpop.f32.mrf.mxu2  ;;  %v1662_v31 = vpop.f32.mrf.mxu3  ;;  %2912 = vrsqrt.f32 %v1750_v18  ;;  %vm1763_vm2 = vweird.f32 %v1750_v18 }
 0x1a2   : > { %1908 = vadd.xlane.f32.xlu1 %v1895_v58  ;;  %1844 = vadd.xlane.f32.xlu2 %v3639_v47  ;;  %v3713_v47 = vpop.xlane.xlu2 %1838 }
 0x1a3   : > { %1848 = vadd.xlane.f32.xlu0 %v3663_v0 }
 0x1a6   : > { %v1739_v0 = vpop.xlane.xlu0 %1738 }
 0x1a7   : > { %v1751_v53 = vadd.f32 1e-12, %v1739_v0  ;;  %v3726_v1 = vpop.eup %2912 }
 0x1a8   : > { %v1758_v44 = vmul.f32 %v3726_v1, %v1750_v18  ;;  %vm1764_vm0 = vweird.f32 %v3726_v1 }
 0x1a9   : > { %2914 = vrsqrt.f32 %v1751_v53  ;;  %vm3779_vm3 = vmor %vm1763_vm2, %vm1764_vm0  ;;  %vm1773_vm4 = vweird.f32 %v1751_v53 }
 0x1aa   : > { %2003 = vadd.xlane.f32.xlu1 %v1994_v33  ;;  %2007 = vadd.xlane.f32.xlu2 %v1996_v43  ;;  %v1759_v5 = vmul.f32 %v3726_v1, %v1758_v44 }
 0x1ab   : > { %2011 = vadd.xlane.f32.xlu0 %v1998_v13 }
 0x1ac   : > { %v1760_v56 = vmul.f32 0.5, %v1759_v5  ;;  %v3831_v5 = vstv %s1873_s14  ;;  %s3065_s14 = scalar_lea.hbm %s4041_s5, 16 }
 0x1ad   : > { %p3067_p11 = scmp.lt.s32.totalorder %s3065_s14, %s3061_s6 }
 0x1ae   : > { %v1741_v26 = vpop.xlane.xlu2 %1740  ;;  %v3715_v28 = vpop.xlane.xlu0 %1840  ;;  %v1761_v7 = vsub.f32 1.5, %v1760_v56 }
 0x1af   : > { %v3717_v62 = vadd.f32 1e-12, %v1741_v26  ;;  %v3728_v32 = vpop.eup %2914  ;;  %p3068_p12 = por %p3067_p11, %p3066_p10 }
 0x1b0   : > { %v1768_v55 = vmul.f32 %v3728_v32, %v1751_v53  ;;  %v1762_v59 = vmul.f32 %v3726_v1, %v1761_v7  ;;  %vm1774_vm1 = vweird.f32 %v3728_v32 }
 0x1b1   : > { %2916 = vrsqrt.f32 %v3717_v62  ;;  %vm3786_vm5 = vmor %vm1773_vm4, %vm1774_vm1  ;;  %vm1783_vm7 = vweird.f32 %v3717_v62  ;;  %p3069_p13 = pnand %p3068_p12, %p3064_p8 }
 0x1b2   : > { %1846 = vadd.xlane.f32.xlu1 %v3651_v42  ;;  %1850 = vadd.xlane.f32.xlu2 %v3671_v17  ;;  %v1769_v12 = vmul.f32 %v3728_v32, %v1768_v55  ;;  %v1766_v9 = vsel %vm3779_vm3, %v3726_v1, %v1762_v59 }
 0x1b3   : > { %v1852_v19 = vmul.f32 %v3713_v47, %v1766_v9 }
 0x1b4   : > { %v1770_v37 = vmul.f32 0.5, %v1769_v12 }
 0x1b6   : > { %v3719_v42 = vpop.xlane.xlu0 %1842  ;;  %v1771_v2 = vsub.f32 1.5, %v1770_v37 }
 0x1b7   : > { %v3731_v49 = vpop.eup %2916 }
 0x1b8   : > { %v1778_v11 = vmul.f32 %v3731_v49, %v3717_v62  ;;  %v1772_v52 = vmul.f32 %v3728_v32, %v1771_v2  ;;  %vm1784_vm6 = vweird.f32 %v3731_v49 }
 0x1b9   : > { %vm1785_vm8 = vmor %vm1783_vm7, %vm1784_vm6 }
 0x1ba   : > { %2009 = vadd.xlane.f32.xlu1 %v1997_v34  ;;  %v1779_v36 = vmul.f32 %v3731_v49, %v1778_v11  ;;  %v1776_v31 = vsel %vm3786_vm5, %v3728_v32, %v1772_v52 }
 0x1bb   : > { %v1853_v0 = vmul.f32 %v3715_v28, %v1776_v31 }
 0x1bc   : > { %v1780_v14 = vmul.f32 0.5, %v1779_v36 }
 0x1bd   : > { %v1860_v55 = vsub.f32 1.0, %v1853_v0 }
 0x1be   : > { %v1745_v29 = vpop.xlane.xlu2 %1744  ;;  %v1743_v16 = vpop.xlane.xlu0 %1742  ;;  %v1781_v6 = vsub.f32 1.5, %v1780_v14 }
 0x1bf   : > { %v3747_v21 = vadd.f32 1e-12, %v1745_v29  ;;  %v3754_v3 = vadd.f32 1e-12, %v1743_v16  ;;  %v1859_v16 = vsub.f32 1.0, %v1852_v19  ;;  %v3845_v7 = vmul.f32 %v3831_v5, %v1860_v55 }
 0x1c0   : > { %v1782_v54 = vmul.f32 %v3731_v49, %v1781_v6 }
 0x1c1   : > { %v3849_v14 = vmul.f32 %v3831_v5, %v1859_v16  ;;  %vm1793_vm15 = vweird.f32 %v3754_v3  ;;  %vm1803_vm1 = vweird.f32 %v3747_v21 }
 0x1c6   : > { %v1747_v60 = vpop.xlane.xlu1 %1746 }
 0x1c7   : > { %v3769_v24 = vadd.f32 1e-12, %v1747_v60  ;;  %v1786_v60 = vsel %vm1785_vm8, %v3731_v49, %v1782_v54 }
 0x1c8   : > { %v1854_v32 = vmul.f32 %v3719_v42, %v1786_v60 }
 0x1c9   : > { %vm1813_vm6 = vweird.f32 %v3769_v24 }
 0x1ca   : > { %v1861_v37 = vsub.f32 1.0, %v1854_v32 }
 0x1cc   : > { %v3870_v9 = vmul.f32 %v3831_v5, %v1861_v37 }
 0x1ce   : > { %v1749_v41 = vpop.xlane.xlu0 %1748 }
 0x1cf   : > { %v3773_v57 = vadd.f32 1e-12, %v1749_v41 }
 0x1e5   : > { %v1897_v50 = vpop.xlane.xlu1 %1896 }
 0x1e6   : > { %v3734_v20 = vadd.f32 1e-12, %v1897_v50 }
 0x1e8   : > { %2918 = vrsqrt.f32 %v3734_v20  ;;  %vm1923_vm10 = vweird.f32 %v3734_v20 }
 0x1ed   : > { %v3721_v17 = vpop.xlane.xlu1 %1999  ;;  %v3723_v51 = vpop.xlane.xlu2 %2001 }
 0x1ee   : > { %v3750_v22 = vpop.eup %2918 }
 0x1ef   : > { %v1918_v39 = vmul.f32 %v3750_v22, %v3734_v20  ;;  %vm1924_vm9 = vweird.f32 %v3750_v22 }
 0x1f0   : > { %vm3863_vm12 = vmor %vm1923_vm10, %vm1924_vm9 }
 0x1f1   : > { %v1919_v48 = vmul.f32 %v3750_v22, %v1918_v39 }
 0x1f3   : > { %v1920_v34 = vmul.f32 0.5, %v1919_v48 }
 0x1f5   : > { %v1899_v40 = vpop.xlane.xlu1 %1898  ;;  %v1901_v45 = vpop.xlane.xlu2 %1900  ;;  %v1921_v44 = vsub.f32 1.5, %v1920_v34 }
 0x1f6   : > { %v3739_v61 = vadd.f32 1e-12, %v1899_v40  ;;  %v3743_v63 = vadd.f32 1e-12, %v1901_v45 }
 0x1f8   : > { %2920 = vrsqrt.f32 %v3739_v61  ;;  %vm1933_vm13 = vweird.f32 %v3739_v61  ;;  %vm1943_vm4 = vweird.f32 %v3743_v63 }
 0x1f9   : > { %2922 = vrsqrt.f32 %v3743_v63 }
 0x1fa   : > { %2924 = vrsqrt.f32 %v3747_v21 }
 0x1fd   : > { %v1903_v30 = vpop.xlane.xlu1 %1902 }
 0x1fe   : > { %v3752_v8 = vadd.f32 1e-12, %v1903_v30  ;;  %v3756_v15 = vpop.eup %2920  ;;  %v1922_v30 = vmul.f32 %v3750_v22, %v1921_v44 }
 0x1ff   : > { %v3765_v10 = vpop.eup %2922  ;;  %v1928_v25 = vmul.f32 %v3756_v15, %v3739_v61  ;;  %vm1934_vm11 = vweird.f32 %v3756_v15 }
 0x200   : > { %2926 = vrsqrt.f32 %v3752_v8  ;;  %v1938_v4 = vmul.f32 %v3765_v10, %v3743_v63  ;;  %v3795_v58 = vpop.eup %2924  ;;  %vm3881_vm14 = vmor %vm1933_vm13, %vm1934_vm11  ;;  %vm1944_vm0 = vweird.f32 %v3765_v10  ;;  %vm1953_vm9 = vweird.f32 %v3752_v8 }
 0x201   : > { %2928 = vrsqrt.f32 %v3754_v3  ;;  %v1929_v33 = vmul.f32 %v3756_v15, %v1928_v25  ;;  %v1798_v62 = vmul.f32 %v3795_v58, %v3747_v21  ;;  %vm1804_vm2 = vweird.f32 %v3795_v58  ;;  %vm1945_vm8 = vmor %vm1943_vm4, %vm1944_vm0 }
 0x202   : > { %v1939_v26 = vmul.f32 %v3765_v10, %v1938_v4  ;;  %vm3944_vm4 = vmor %vm1803_vm1, %vm1804_vm2 }
 0x203   : > { %v1930_v50 = vmul.f32 0.5, %v1929_v33  ;;  %v1799_v56 = vmul.f32 %v3795_v58, %v1798_v62  ;;  %v1926_v33 = vsel %vm3863_vm12, %v3750_v22, %v1922_v30  ;;  %vm1823_vm12 = vweird.f32 %v3773_v57 }
 0x204   : > { %v1940_v40 = vmul.f32 0.5, %v1939_v26  ;;  %v3142_v26 = vmov 0  }
 0x205   : > { %v1905_v35 = vpop.xlane.xlu0 %1904  ;;  %v1931_v11 = vsub.f32 1.5, %v1930_v50  ;;  %v1800_v48 = vmul.f32 0.5, %v1799_v56  ;;  %2908 = vset.pattern.permute.xlu1 %v3142_v26  ;;  %2909 = vset.pattern.permute.xlu0 %v3142_v26 }
 0x206   : > { %v3775_v23 = vadd.f32 1e-12, %v1905_v35  ;;  %v3805_v43 = vpop.eup %2926  ;;  %v1941_v39 = vsub.f32 1.5, %v1940_v40 }
 0x207   : > { %v3809_v13 = vpop.eup %2928  ;;  %v1948_v29 = vmul.f32 %v3805_v43, %v3752_v8  ;;  %v1932_v59 = vmul.f32 %v3756_v15, %v1931_v11  ;;  %vm1954_vm5 = vweird.f32 %v3805_v43 }
 0x208   : > { %2930 = vrsqrt.f32 %v3775_v23  ;;  %v1788_v1 = vmul.f32 %v3809_v13, %v3754_v3  ;;  %v1942_v19 = vmul.f32 %v3765_v10, %v1941_v39  ;;  %vm1794_vm3 = vweird.f32 %v3809_v13  ;;  %vm3920_vm10 = vmor %vm1953_vm9, %vm1954_vm5 }
 0x209   : > { %2932 = vrsqrt.f32 %v3769_v24  ;;  %v1949_v45 = vmul.f32 %v3805_v43, %v1948_v29  ;;  %v1936_v61 = vsel %vm3881_vm14, %v3756_v15, %v1932_v59  ;;  %vm1795_vm13 = vmor %vm1793_vm15, %vm1794_vm3  ;;  %vm1963_vm0 = vweird.f32 %v3775_v23 }
 0x20a   : > { %2934 = vrsqrt.f32 %v3773_v57  ;;  %v1789_v42 = vmul.f32 %v3809_v13, %v1788_v1  ;;  %v2013_v1 = vmul.f32 %v3721_v17, %v1926_v33  ;;  %v2014_v15 = vmul.f32 %v3723_v51, %v1936_v61 }
 0x20b   : > { %v1950_v6 = vmul.f32 0.5, %v1949_v45  ;;  %v1946_v55 = vsel %vm1945_vm8, %v3765_v10, %v1942_v19 }
 0x20c   : > { %v1790_v20 = vmul.f32 0.5, %v1789_v42  ;;  %v2020_v56 = vsub.f32 1.0, %v2013_v1  ;;  %v2021_v10 = vsub.f32 1.0, %v2014_v15 }
 0x20d   : > { %v1907_v18 = vpop.xlane.xlu2 %1906  ;;  %v3851_v2 = vpop.xlane.xlu0 %2005  ;;  %v1951_v60 = vsub.f32 1.5, %v1950_v6 }
 0x20e   : > { %v3817_v53 = vpop.eup %2930  ;;  %v3823_v47 = vadd.f32 1e-12, %v1907_v18  ;;  %v1791_v29 = vsub.f32 1.5, %v1790_v20  ;;  %v1801_v18 = vsub.f32 1.5, %v1800_v48 }
 0x20f   : > { %v3825_v28 = vpop.eup %2932  ;;  %v1958_v12 = vmul.f32 %v3817_v53, %v3775_v23  ;;  %v1952_v17 = vmul.f32 %v3805_v43, %v1951_v60  ;;  %vm1964_vm11 = vweird.f32 %v3817_v53 }
 0x210   : > { %v3828_v49 = vpop.eup %2934  ;;  %2936 = vrsqrt.f32 %v3823_v47  ;;  %v1808_v36 = vmul.f32 %v3825_v28, %v3769_v24  ;;  %vm1814_vm7 = vweird.f32 %v3825_v28  ;;  %v1792_v40 = vmul.f32 %v3809_v13, %v1791_v29  ;;  %vm1965_vm15 = vmor %vm1963_vm0, %vm1964_vm11 }
 0x211   : > { %v1818_v41 = vmul.f32 %v3828_v49, %v3773_v57  ;;  %v1959_v52 = vmul.f32 %v3817_v53, %v1958_v12  ;;  %v1802_v12 = vmul.f32 %v3795_v58, %v1801_v18  ;;  %v1956_v8 = vsel %vm3920_vm10, %v3805_v43, %v1952_v17  ;;  %vm3961_vm1 = vmor %vm1813_vm6, %vm1814_vm7 }
 0x212   : > { %v1809_v46 = vmul.f32 %v3825_v28, %v1808_v36  ;;  %vm1824_vm14 = vweird.f32 %v3828_v49  ;;  %v2016_v54 = vmul.f32 %v3851_v2, %v1956_v8  ;;  %vm1973_vm8 = vweird.f32 %v3823_v47 }
 0x213   : > { %v1819_v31 = vmul.f32 %v3828_v49, %v1818_v41  ;;  %v1960_v22 = vmul.f32 0.5, %v1959_v52  ;;  %v3916_v41 = vstv %s3877_s27  ;;  %v1796_v52 = vsel %vm1795_vm13, %v3809_v13, %v1792_v40  ;;  %vm1825_vm3 = vmor %vm1823_vm12, %vm1824_vm14 }
 0x214   : > { %v1810_v50 = vmul.f32 0.5, %v1809_v46  ;;  %v2036_v20 = vmul.f32 %v3916_v41, %v2020_v56  ;;  %v2037_v13 = vmul.f32 %v3916_v41, %v2021_v10  ;;  %v1806_v23 = vsel %vm3944_vm4, %v3795_v58, %v1802_v12 }
 0x215   : > { %v1909_v25 = vpop.xlane.xlu1 %1908  ;;  %v3856_v35 = vpop.xlane.xlu2 %1844  ;;  %v1820_v62 = vmul.f32 0.5, %v1819_v31  ;;  %v1961_v16 = vsub.f32 1.5, %v1960_v22  ;;  %v2023_v26 = vsub.f32 1.0, %v2016_v54  ;;  %vm2056_vm10 = vcmp.lt.s32.totalorder %v3403_v38, 50 }
 0x216   : > { %v3858_v27 = vpop.eup %2936  ;;  %v3867_v4 = vadd.f32 1e-12, %v1909_v25  ;;  %v1811_v11 = vsub.f32 1.5, %v1810_v50  ;;  %v1849_v36 = vpop.xlane.xlu0 %1848  ;;  %v1855_v31 = vmul.f32 %v3856_v35, %v1796_v52  ;;  %v2044_v50 = vadd.f32 %v2037_v13, %v3845_v7 }
 0x217   : > { %v1968_v0 = vmul.f32 %v3858_v27, %v3823_v47  ;;  %v1821_v37 = vsub.f32 1.5, %v1820_v62  ;;  %v1962_v6 = vmul.f32 %v3817_v53, %v1961_v16  ;;  %vm1974_vm7 = vweird.f32 %v3858_v27 }
 0x218   : > { %2938 = vrsqrt.f32 %v3867_v4  ;;  %v1812_v25 = vmul.f32 %v3825_v28, %v1811_v11  ;;  %vm1983_vm5 = vweird.f32 %v3867_v4  ;;  %vm1975_vm9 = vmor %vm1973_vm8, %vm1974_vm7  ;;  %vm2077_vm11 = vcmask 1040384  }
 0x219   : > { %v1969_v32 = vmul.f32 %v3858_v27, %v1968_v0  ;;  %v1822_v43 = vmul.f32 %v3828_v49, %v1821_v37  ;;  %v1966_v33 = vsel %vm1965_vm15, %v3817_v53, %v1962_v6  ;;  %v2043_v53 = vadd.f32 %v2036_v20, %v3849_v14 }
 0x21a   : > { %v1816_v19 = vsel %vm3961_vm1, %v3825_v28, %v1812_v25  ;;  %v1862_v28 = vsub.f32 1.0, %v1855_v31 }
 0x21b   : > { %v1970_v39 = vmul.f32 0.5, %v1969_v32  ;;  %v1826_v60 = vsel %vm1825_vm3, %v3828_v49, %v1822_v43  ;;  %v1857_v1 = vmul.f32 %v1849_v36, %v1816_v19  ;;  %v2064_v32 = vadd.f32 %v2044_v50, %v2043_v53 }
 0x21c   : > { %v1878_v7 = vmul.f32 %v3831_v5, %v1862_v28 }
 0x21d   : > { %v2004_v44 = vpop.xlane.xlu1 %2003  ;;  %v2008_v63 = vpop.xlane.xlu2 %2007  ;;  %v1971_v34 = vsub.f32 1.5, %v1970_v39  ;;  %v1864_v40 = vsub.f32 1.0, %v1857_v1 }
 0x21e   : > { %v3908_v51 = vpop.eup %2938  ;;  %v2015_v45 = vmul.f32 %v2004_v44, %v1946_v55  ;;  %v2017_v61 = vmul.f32 %v2008_v63, %v1966_v33  ;;  %v2012_v57 = vpop.xlane.xlu0 %2011  ;;  %v2039_v55 = vmul.f32 %v3916_v41, %v2023_v26 }
 0x21f   : > { %v1978_v42 = vmul.f32 %v3908_v51, %v3867_v4  ;;  %vm1984_vm2 = vweird.f32 %v3908_v51  ;;  %v1972_v14 = vmul.f32 %v3858_v27, %v1971_v34  ;;  %v1880_v37 = vmul.f32 %v3831_v5, %v1864_v40 }
 0x220   : > { %v2022_v48 = vsub.f32 1.0, %v2015_v45  ;;  %vm1985_vm6 = vmor %vm1983_vm5, %vm1984_vm2  ;;  %v2024_v49 = vsub.f32 1.0, %v2017_v61  ;;  %v2046_v12 = vadd.f32 %v2039_v55, %v1878_v7 }
 0x221   : > { %v1979_v59 = vmul.f32 %v3908_v51, %v1978_v42 }
 0x222   : > { %v2038_v58 = vmul.f32 %v3916_v41, %v2022_v48 }
 0x223   : > { %v1980_v46 = vmul.f32 0.5, %v1979_v59 }
 0x224   : > { %v2045_v4 = vadd.f32 %v2038_v58, %v3870_v9  ;;  %v2040_v9 = vmul.f32 %v3916_v41, %v2024_v49 }
 0x225   : > { %v1981_v2 = vsub.f32 1.5, %v1980_v46  ;;  %v1847_v35 = vpop.xlane.xlu1 %1846  ;;  %v1851_v24 = vpop.xlane.xlu2 %1850 }
 0x226   : > { %v1856_v22 = vmul.f32 %v1847_v35, %v1806_v23  ;;  %v1858_v62 = vmul.f32 %v1851_v24, %v1826_v60  ;;  %v2065_v11 = vadd.f32 %v2064_v32, %v2045_v4 }
 0x227   : > { %v1982_v0 = vmul.f32 %v3908_v51, %v1981_v2 }
 0x228   : > { %v1863_v29 = vsub.f32 1.0, %v1856_v22  ;;  %v1865_v63 = vsub.f32 1.0, %v1858_v62  ;;  %v2066_v10 = vadd.f32 %v2065_v11, %v2046_v12 }
 0x229   : > { %v1986_v18 = vsel %vm1985_vm6, %v3908_v51, %v1982_v0  ;;  %v1976_v51 = vsel %vm1975_vm9, %v3858_v27, %v1972_v14 }
 0x22a   : > { %v2019_v15 = vmul.f32 %v2012_v57, %v1986_v18  ;;  %v1879_v44 = vmul.f32 %v3831_v5, %v1863_v29  ;;  %v1881_v36 = vmul.f32 %v3831_v5, %v1865_v63 }
 0x22c   : > { %v2026_v17 = vsub.f32 1.0, %v2019_v15  ;;  %v2047_v56 = vadd.f32 %v2040_v9, %v1879_v44 }
 0x22d   : > { %v2010_v16 = vpop.xlane.xlu1 %2009 }
 0x22e   : > { %v2018_v45 = vmul.f32 %v2010_v16, %v1976_v51  ;;  %v2042_v47 = vmul.f32 %v3916_v41, %v2026_v17  ;;  %v2067_v8 = vadd.f32 %v2066_v10, %v2047_v56 }
 0x230   : > { %v2025_v42 = vsub.f32 1.0, %v2018_v45  ;;  %v2049_v39 = vadd.f32 %v2042_v47, %v1881_v36 }
 0x232   : > { %v2041_v30 = vmul.f32 %v3916_v41, %v2025_v42  ;;  %v2063_v6 = vsel %vm2056_vm10, %v2049_v39, 0.0 }
 0x234   : > { %v2048_v27 = vadd.f32 %v2041_v30, %v1880_v37 }
 0x236   : > { %v2068_v59 = vadd.f32 %v2067_v8, %v2048_v27 }
 0x238   : > { %v2069_v52 = vadd.f32 %v2068_v59, %v2063_v6 }
 0x23a   : > { %v2070_v25 = vrot.slane %v2069_v52, 4 }
 0x23c   : > { %v2071_v48 = vadd.f32 %v2070_v25, %v2069_v52 }
 0x23e   : > { %v2072_v20 = vrot.slane %v2071_v48, 2 }
 0x240   : > { %v2073_v46 = vadd.f32 %v2072_v20, %v2071_v48 }
 0x242   : > { %v2074_v3 = vrot.slane %v2073_v46, 1 }
 0x244   : > { %v2075_v5 = vadd.f32 %v2074_v3, %v2073_v46 }
 0x246   : > { %v2076_v43 = vmul.f32 0.02, %v2075_v5 }
 0x248   : > { %v2078_v41 = vsel %vm2077_vm11, %v2076_v43, 0.0 }
 0x249   : > { %2081 = vperm.xlu1 %2908, %v2078_v41  }
 0x2bb   : > { %v2082_v38 = vpop.permute.xlu1 %2081 }
 0x2bc   : > { %2084 = vst [vmem:[%s311_s7] sm:$0xff] %v2082_v38 }
 0x2bd   : > { %3072 = shalt.err (!%p3069_p13)
}
 0x2be   : > { %2826 = dma.vmem_to_hbm [thread:$0]  (%p3254_p4), %s2099_s12, 128, %s2101_s13, %s2086_s28  }
 0x2bf PF: > { %s2112_s26 = sand.u32 1, %s3115_s18   ;;  %p2843_p0 = pnand %p2220_p5, %p3262_p7 }
 0x2c0   : > { %s2113_s16 = scalar_lea.sflag [#allocation6], %s2112_s26 }
 0x2c1   : > { %p2844_p2 = pneg %p2843_p0 }
 0x2c3   : > { %3110 = dma.done.wait (%p2844_p2), %s2113_s16, 128  }
 0x2c4   : > { %3112 = vsyncadd (%p2844_p2), %s2113_s16, 4294967168  ;;  %s23_s23 = sadd.s32 1, %s3135_s23   ;;  %s4062_s18 = smov %s3119_s19 }
 0x2c5   : > { %p20_p6 = scmp.ge.s32.totalorder %s23_s23, 4   ;;  %s4063_s19 = smov %s3123_s20 }
 0x2c6   : > { %s4064_s20 = smov %s3260_s9  ;;  %s4065_s21 = smov %s3131_s22 }
 0x2c7   : > { %s4066_s22 = smov %s4068_s25  ;;  %22 = sbr.rel (!%p20_p6) target bundleno = 8 (0x8), region = 108 }
 0x2cc   :  { %2119 = vsyncpa [#allocation5], 1 }
 0x2cd   :  { %2121 = vsyncpa [#allocation5 + $0x1], 1 }
 0x2ce   :  { %2122 = vsyncpa [#allocation10], 1 }
 0x2cf   :  { %2123 = vsyncpa [#allocation6], 1 }
 0x2d0   :  { %2125 = vsyncpa [#allocation6 + $0x1], 1 }
 0x2d1   :  { %2126 = vsyncpa [#allocation7], 1 }
 0x2d2   :  { %2128 = vsyncpa [#allocation7 + $0x1], 1 }

</bundles_post_ra>
